<compile_context>
chip_gen: v6e
topology: v6e:2x2x1
jax: 0.10.0
libtpu: 0.0.40
codegen_flags: <defaults>
</compile_context>

<pallas_src>
import functools

import jax
import jax.numpy as jnp
from jax import lax
from jax.experimental import pallas as pl
from jax.experimental.pallas import tpu as pltpu


KERNEL_SIZE = 7
PAD = KERNEL_SIZE // 2


def _fused_spatial_attention_kernel(w_ref, x_ref, o_ref,
                                    sum_ref, max_ref, pad_ref,
                                    *, H, W, K):
    """Fused channel-pool + 7x7 conv + sigmoid.

    w_ref:   SMEM (2*K*K,) f32 weights, ordered (c, dy, dx); the avg-channel
             (c == 0) weights already carry the 1/C factor.
    x_ref:   VMEM (1, TILE_C, H, W) block of x, native dtype.
    o_ref:   VMEM (1, 1, H, W) gate block (same block across the C grid axis,
             written only on the last C step).
    sum_ref: VMEM (H, W) f32 channel-sum accumulator.
    max_ref: VMEM (H, W) f32 channel-max accumulator.
    pad_ref: VMEM (2, H+2*PAD, W+2*PAD) f32 zero-padded pooled map.
    """
    c_idx = pl.program_id(1)
    c_last = pl.num_programs(1) - 1
    pad = K // 2

    @pl.when(c_idx == 0)
    def _init():
        sum_ref[...] = jnp.zeros_like(sum_ref)
        max_ref[...] = jnp.full_like(max_ref, -jnp.inf)

    # Channel reduction for this C tile (cast to f32 after the DMA load).
    x = x_ref[0].astype(jnp.float32)                      # (TILE_C, H, W)
    sum_ref[...] = sum_ref[...] + jnp.sum(x, axis=0)      # mean = sum * (w/C)
    max_ref[...] = jnp.maximum(max_ref[...], jnp.max(x, axis=0))

    @pl.when(c_idx == c_last)
    def _finalize():
        # Build the tiny zero-padded 2-channel pooled map in VMEM.
        pad_ref[...] = jnp.zeros_like(pad_ref)
        pad_ref[0, pad:pad + H, pad:pad + W] = sum_ref[...]
        pad_ref[1, pad:pad + H, pad:pad + W] = max_ref[...]

        # 7x7 cross-correlation as a 98-tap scalar-weighted accumulation.
        acc = jnp.zeros((H, W), jnp.float32)
        for c in range(2):
            for dy in range(K):
                for dx in range(K):
                    wv = w_ref[c * K * K + dy * K + dx]          # SMEM scalar
                    acc = acc + wv * pad_ref[c, dy:dy + H, dx:dx + W]

        o_ref[0, 0] = jax.nn.sigmoid(acc).astype(o_ref.dtype)


def spatial_attention(x, weight, *, c_tile_target_bytes=4 << 20):
    """x: (B, C, H, W) any float dtype; weight: (1, 2, 7, 7).

    Returns the sigmoid gate (B, 1, H, W) in x.dtype.
    """
    B, C, H, W = x.shape
    K = KERNEL_SIZE

    # Channel tile: largest divisor of C whose (TILE_C, H, W) input block stays
    # under the per-block VMEM target (Pallas double-buffers it).
    bytes_per_ch = H * W * jnp.dtype(x.dtype).itemsize
    tile_c = 1
    for d in range(C, 0, -1):
        if C % d == 0 and d * bytes_per_ch <= c_tile_target_bytes:
            tile_c = d
            break
    n_c = C // tile_c

    # Conv weight (out=1, in=2, kh, kw): fold 1/C into the avg-channel weights
    # (so the in-kernel channel mean is a plain sum), flatten (c, dy, dx).
    w = weight[0].astype(jnp.float32)                      # (2, K, K)
    w = jnp.concatenate([w[0:1] / C, w[1:2]], axis=0)
    w_flat = w.reshape(2 * K * K)                          # SMEM operand

    kernel = functools.partial(_fused_spatial_attention_kernel, H=H, W=W, K=K)

    gate = pl.pallas_call(
        kernel,
        out_shape=jax.ShapeDtypeStruct((B, 1, H, W), x.dtype),
        grid=(B, n_c),                                     # reduction axis last
        in_specs=[
            pl.BlockSpec(memory_space=pltpu.MemorySpace.SMEM),     # weights
            pl.BlockSpec((1, tile_c, H, W), lambda b, c: (b, c, 0, 0)),
        ],
        out_specs=pl.BlockSpec((1, 1, H, W), lambda b, c: (b, 0, 0, 0)),
        scratch_shapes=[
            pltpu.VMEM((H, W), jnp.float32),               # channel sum
            pltpu.VMEM((H, W), jnp.float32),               # channel max
            pltpu.VMEM((2, H + 2 * PAD, W + 2 * PAD), jnp.float32),
        ],
        compiler_params=pltpu.CompilerParams(
            dimension_semantics=("parallel", "arbitrary")),
    )(w_flat, x)

    return gate


# ---------------------------------------------------------------------------
def _reference(x, weight):
    """Plain-JAX mirror of the PyTorch forward."""
    xf = x.astype(jnp.float32)
    avg = jnp.mean(xf, axis=1, keepdims=True)
    mx = jnp.max(xf, axis=1, keepdims=True)
    cat = jnp.concatenate([avg, mx], axis=1)
    conv = lax.conv_general_dilated(
        cat, weight.astype(jnp.float32), window_strides=(1, 1),
        padding=((PAD, PAD), (PAD, PAD)),
        dimension_numbers=("NCHW", "OIHW", "NCHW"),
        precision=lax.Precision.HIGHEST)
    return jax.nn.sigmoid(conv)


if __name__ == "__main__":
    key = jax.random.PRNGKey(0)
    wkey, xkey, xkey2 = jax.random.split(key, 3)

    # nn.Conv2d(2, 1, 7, bias=False) default init: kaiming_uniform(a=sqrt(5))
    fan_in = 2 * KERNEL_SIZE * KERNEL_SIZE
    bound = 1.0 / (fan_in ** 0.5)
    weight = jax.random.uniform(wkey, (1, 2, KERNEL_SIZE, KERNEL_SIZE),
                                jnp.float32, minval=-bound, maxval=bound)

    # 1) small aligned case
    x1 = jax.random.normal(xkey, (2, 4, 16, 16), jnp.float32)
    out1 = jax.jit(spatial_attention)(x1, weight)
    jax.block_until_ready(out1)
    assert out1.shape == (2, 1, 16, 16)
    assert bool(jnp.all(jnp.isfinite(out1)))
    assert bool(jnp.allclose(out1, _reference(x1, weight), atol=1e-5, rtol=1e-5))

    # 2) unaligned case: C not a multiple of 8, H*W not a multiple of 128
    x2 = jax.random.normal(xkey2, (2, 3, 14, 14), jnp.float32)
    out2 = jax.jit(spatial_attention)(x2, weight)
    jax.block_until_ready(out2)
    assert out2.shape == (2, 1, 14, 14)
    assert bool(jnp.allclose(out2, _reference(x2, weight), atol=1e-5, rtol=1e-5))

    # 3) force channel tiling (TILE_C=2 -> 2-step reduction over the C axis)
    fwd_tiled = jax.jit(functools.partial(spatial_attention,
                                          c_tile_target_bytes=2 * 16 * 16 * 4))
    out3 = fwd_tiled(x1, weight)
    jax.block_until_ready(out3)
    assert bool(jnp.allclose(out3, _reference(x1, weight), atol=1e-5, rtol=1e-5))

    print("KERNEL_OK")
</pallas_src>

<mosaic_0001>
module attributes {stable_mosaic.version = 11 : i64} {
  func.func @_fused_spatial_attention_kernel(%arg0: i32, %arg1: i32, %arg2: memref<98xf32, #tpu.memory_space<smem>>, %arg3: memref<1x4x16x16xf32, #tpu.memory_space<vmem>>, %arg4: memref<1x1x16x16xf32, #tpu.memory_space<vmem>>, %arg5: memref<16x16xf32, #tpu.memory_space<vmem>>, %arg6: memref<16x16xf32, #tpu.memory_space<vmem>>, %arg7: memref<2x22x22xf32, #tpu.memory_space<vmem>>) attributes {dimension_semantics = [#tpu.dimension_semantics<parallel>, #tpu.dimension_semantics<arbitrary>], iteration_bounds = array<i64: 2, 1>, scalar_prefetch = 0 : i64, scratch_operands = 3 : i64, tpu.core_type = #tpu.core_type<tc>, window_params = [{transform_indices = @transform_0, window_bounds = array<i64: 98>}, {transform_indices = @transform_1, window_bounds = array<i64: 1, 4, 16, 16>}, {transform_indices = @transform_2, window_bounds = array<i64: 1, 1, 16, 16>}]} {
    %c0_i32 = arith.constant 0 : i32
    %0 = arith.cmpi eq, %arg1, %c0_i32 : i32
    %1 = arith.extui %0 : i1 to i32
    %c0_i32_0 = arith.constant 0 : i32
    %2 = arith.cmpi ne, %1, %c0_i32_0 : i32
    scf.if %2 {
      %cst_15 = arith.constant 0.000000e+00 : f32
      %16 = vector.broadcast %cst_15 : f32 to vector<16x16xf32>
      %c0_16 = arith.constant 0 : index
      %c0_17 = arith.constant 0 : index
      %17 = vector.load %arg5[%c0_16, %c0_17] : memref<16x16xf32, #tpu.memory_space<vmem>>, vector<16x16xf32>
      tpu.vector_store %arg5[%c0_16, %c0_17], %16 {strides = array<i32>} : memref<16x16xf32, #tpu.memory_space<vmem>>, vector<16x16xf32>,
      %cst_18 = arith.constant 0xFF800000 : f32
      %18 = vector.broadcast %cst_18 : f32 to vector<16x16xf32>
      %c0_19 = arith.constant 0 : index
      %c0_20 = arith.constant 0 : index
      %19 = vector.load %arg6[%c0_19, %c0_20] : memref<16x16xf32, #tpu.memory_space<vmem>>, vector<16x16xf32>
      tpu.vector_store %arg6[%c0_19, %c0_20], %18 {strides = array<i32>} : memref<16x16xf32, #tpu.memory_space<vmem>>, vector<16x16xf32>,
    } else {
    }
    %c0 = arith.constant 0 : index
    %c0_1 = arith.constant 0 : index
    %c0_2 = arith.constant 0 : index
    %c0_3 = arith.constant 0 : index
    %3 = vector.load %arg3[%c0, %c0_1, %c0_2, %c0_3] : memref<1x4x16x16xf32, #tpu.memory_space<vmem>>, vector<1x4x16x16xf32>
    %4 = vector.shape_cast %3 : vector<1x4x16x16xf32> to vector<4x16x16xf32>
    %c0_4 = arith.constant 0 : index
    %c0_5 = arith.constant 0 : index
    %5 = vector.load %arg5[%c0_4, %c0_5] : memref<16x16xf32, #tpu.memory_space<vmem>>, vector<16x16xf32>
    %cst = arith.constant dense<0.000000e+00> : vector<16x16xf32>
    %6 = vector.multi_reduction <add>, %4, %cst [0] : vector<4x16x16xf32> to vector<16x16xf32>
    %7 = arith.addf %5, %6 : vector<16x16xf32>
    %c0_6 = arith.constant 0 : index
    %c0_7 = arith.constant 0 : index
    %8 = vector.load %arg5[%c0_6, %c0_7] : memref<16x16xf32, #tpu.memory_space<vmem>>, vector<16x16xf32>
    tpu.vector_store %arg5[%c0_6, %c0_7], %7 {strides = array<i32>} : memref<16x16xf32, #tpu.memory_space<vmem>>, vector<16x16xf32>,
    %c0_8 = arith.constant 0 : index
    %c0_9 = arith.constant 0 : index
    %9 = vector.load %arg6[%c0_8, %c0_9] : memref<16x16xf32, #tpu.memory_space<vmem>>, vector<16x16xf32>
    %cst_10 = arith.constant dense<0xFF800000> : vector<16x16xf32>
    %10 = vector.multi_reduction <maximumf>, %4, %cst_10 [0] : vector<4x16x16xf32> to vector<16x16xf32>
    %11 = arith.maximumf %9, %10 : vector<16x16xf32>
    %c0_11 = arith.constant 0 : index
    %c0_12 = arith.constant 0 : index
    %12 = vector.load %arg6[%c0_11, %c0_12] : memref<16x16xf32, #tpu.memory_space<vmem>>, vector<16x16xf32>
    tpu.vector_store %arg6[%c0_11, %c0_12], %11 {strides = array<i32>} : memref<16x16xf32, #tpu.memory_space<vmem>>, vector<16x16xf32>,
    %c0_i32_13 = arith.constant 0 : i32
    %13 = arith.cmpi eq, %arg1, %c0_i32_13 : i32
    %14 = arith.extui %13 : i1 to i32
    %c0_i32_14 = arith.constant 0 : i32
    %15 = arith.cmpi ne, %14, %c0_i32_14 : i32
    scf.if %15 {
      %cst_15 = arith.constant 0.000000e+00 : f32
      %16 = vector.broadcast %cst_15 : f32 to vector<2x22x22xf32>
      %c0_16 = arith.constant 0 : index
      %c0_17 = arith.constant 0 : index
      %c0_18 = arith.constant 0 : index
      %17 = vector.load %arg7[%c0_16, %c0_17, %c0_18] : memref<2x22x22xf32, #tpu.memory_space<vmem>>, vector<2x22x22xf32>
      tpu.vector_store %arg7[%c0_16, %c0_17, %c0_18], %16 {strides = array<i32>} : memref<2x22x22xf32, #tpu.memory_space<vmem>>, vector<2x22x22xf32>,
      %c0_19 = arith.constant 0 : index
      %c0_20 = arith.constant 0 : index
      %18 = vector.load %arg5[%c0_19, %c0_20] : memref<16x16xf32, #tpu.memory_space<vmem>>, vector<16x16xf32>
      %c0_21 = arith.constant 0 : index
      %c3 = arith.constant 3 : index
      %c3_22 = arith.constant 3 : index
      %19 = vector.load %arg7[%c0_21, %c3, %c3_22] : memref<2x22x22xf32, #tpu.memory_space<vmem>>, vector<1x16x16xf32>
      %20 = vector.shape_cast %19 : vector<1x16x16xf32> to vector<16x16xf32>
      %21 = vector.shape_cast %18 : vector<16x16xf32> to vector<1x16x16xf32>
      tpu.vector_store %arg7[%c0_21, %c3, %c3_22], %21 {strides = array<i32>} : memref<2x22x22xf32, #tpu.memory_space<vmem>>, vector<1x16x16xf32>,
      %c0_23 = arith.constant 0 : index
      %c0_24 = arith.constant 0 : index
      %22 = vector.load %arg6[%c0_23, %c0_24] : memref<16x16xf32, #tpu.memory_space<vmem>>, vector<16x16xf32>
      %c1 = arith.constant 1 : index
      %c3_25 = arith.constant 3 : index
      %c3_26 = arith.constant 3 : index
      %23 = vector.load %arg7[%c1, %c3_25, %c3_26] : memref<2x22x22xf32, #tpu.memory_space<vmem>>, vector<1x16x16xf32>
      %24 = vector.shape_cast %23 : vector<1x16x16xf32> to vector<16x16xf32>
      %25 = vector.shape_cast %22 : vector<16x16xf32> to vector<1x16x16xf32>
      tpu.vector_store %arg7[%c1, %c3_25, %c3_26], %25 {strides = array<i32>} : memref<2x22x22xf32, #tpu.memory_space<vmem>>, vector<1x16x16xf32>,
      %cst_27 = arith.constant 0.000000e+00 : f32
      %26 = vector.broadcast %cst_27 : f32 to vector<16x16xf32>
      %c0_28 = arith.constant 0 : index
      %27 = memref.load %arg2[%c0_28] : memref<98xf32, #tpu.memory_space<smem>>
      %c0_29 = arith.constant 0 : index
      %c0_30 = arith.constant 0 : index
      %c0_31 = arith.constant 0 : index
      %28 = vector.load %arg7[%c0_29, %c0_30, %c0_31] : memref<2x22x22xf32, #tpu.memory_space<vmem>>, vector<1x16x16xf32>
      %29 = vector.shape_cast %28 : vector<1x16x16xf32> to vector<16x16xf32>
      %30 = vector.broadcast %27 : f32 to vector<16x16xf32>
      %31 = arith.mulf %30, %29 : vector<16x16xf32>
      %32 = arith.addf %26, %31 : vector<16x16xf32>
      %c1_32 = arith.constant 1 : index
      %33 = memref.load %arg2[%c1_32] : memref<98xf32, #tpu.memory_space<smem>>
      %c0_33 = arith.constant 0 : index
      %c0_34 = arith.constant 0 : index
      %c1_35 = arith.constant 1 : index
      %34 = vector.load %arg7[%c0_33, %c0_34, %c1_35] : memref<2x22x22xf32, #tpu.memory_space<vmem>>, vector<1x16x16xf32>
      %35 = vector.shape_cast %34 : vector<1x16x16xf32> to vector<16x16xf32>
      %36 = vector.broadcast %33 : f32 to vector<16x16xf32>
      %37 = arith.mulf %36, %35 : vector<16x16xf32>
      %38 = arith.addf %32, %37 : vector<16x16xf32>
      %c2 = arith.constant 2 : index
      %39 = memref.load %arg2[%c2] : memref<98xf32, #tpu.memory_space<smem>>
      %c0_36 = arith.constant 0 : index
      %c0_37 = arith.constant 0 : index
      %c2_38 = arith.constant 2 : index
      %40 = vector.load %arg7[%c0_36, %c0_37, %c2_38] : memref<2x22x22xf32, #tpu.memory_space<vmem>>, vector<1x16x16xf32>
      %41 = vector.shape_cast %40 : vector<1x16x16xf32> to vector<16x16xf32>
      %42 = vector.broadcast %39 : f32 to vector<16x16xf32>
      %43 = arith.mulf %42, %41 : vector<16x16xf32>
      %44 = arith.addf %38, %43 : vector<16x16xf32>
      %c3_39 = arith.constant 3 : index
      %45 = memref.load %arg2[%c3_39] : memref<98xf32, #tpu.memory_space<smem>>
      %c0_40 = arith.constant 0 : index
      %c0_41 = arith.constant 0 : index
      %c3_42 = arith.constant 3 : index
      %46 = vector.load %arg7[%c0_40, %c0_41, %c3_42] : memref<2x22x22xf32, #tpu.memory_space<vmem>>, vector<1x16x16xf32>
      %47 = vector.shape_cast %46 : vector<1x16x16xf32> to vector<16x16xf32>
      %48 = vector.broadcast %45 : f32 to vector<16x16xf32>
      %49 = arith.mulf %48, %47 : vector<16x16xf32>
      %50 = arith.addf %44, %49 : vector<16x16xf32>
      %c4 = arith.constant 4 : index
      %51 = memref.load %arg2[%c4] : memref<98xf32, #tpu.memory_space<smem>>
      %c0_43 = arith.constant 0 : index
      %c0_44 = arith.constant 0 : index
      %c4_45 = arith.constant 4 : index
      %52 = vector.load %arg7[%c0_43, %c0_44, %c4_45] : memref<2x22x22xf32, #tpu.memory_space<vmem>>, vector<1x16x16xf32>
      %53 = vector.shape_cast %52 : vector<1x16x16xf32> to vector<16x16xf32>
      %54 = vector.broadcast %51 : f32 to vector<16x16xf32>
      %55 = arith.mulf %54, %53 : vector<16x16xf32>
      %56 = arith.addf %50, %55 : vector<16x16xf32>
      %c5 = arith.constant 5 : index
      %57 = memref.load %arg2[%c5] : memref<98xf32, #tpu.memory_space<smem>>
      %c0_46 = arith.constant 0 : index
      %c0_47 = arith.constant 0 : index
      %c5_48 = arith.constant 5 : index
      %58 = vector.load %arg7[%c0_46, %c0_47, %c5_48] : memref<2x22x22xf32, #tpu.memory_space<vmem>>, vector<1x16x16xf32>
      %59 = vector.shape_cast %58 : vector<1x16x16xf32> to vector<16x16xf32>
      %60 = vector.broadcast %57 : f32 to vector<16x16xf32>
      %61 = arith.mulf %60, %59 : vector<16x16xf32>
      %62 = arith.addf %56, %61 : vector<16x16xf32>
      %c6 = arith.constant 6 : index
      %63 = memref.load %arg2[%c6] : memref<98xf32, #tpu.memory_space<smem>>
      %c0_49 = arith.constant 0 : index
      %c0_50 = arith.constant 0 : index
      %c6_51 = arith.constant 6 : index
      %64 = vector.load %arg7[%c0_49, %c0_50, %c6_51] : memref<2x22x22xf32, #tpu.memory_space<vmem>>, vector<1x16x16xf32>
      %65 = vector.shape_cast %64 : vector<1x16x16xf32> to vector<16x16xf32>
      %66 = vector.broadcast %63 : f32 to vector<16x16xf32>
      %67 = arith.mulf %66, %65 : vector<16x16xf32>
      %68 = arith.addf %62, %67 : vector<16x16xf32>
      %c7 = arith.constant 7 : index
      %69 = memref.load %arg2[%c7] : memref<98xf32, #tpu.memory_space<smem>>
      %c0_52 = arith.constant 0 : index
      %c1_53 = arith.constant 1 : index
      %c0_54 = arith.constant 0 : index
      %70 = vector.load %arg7[%c0_52, %c1_53, %c0_54] : memref<2x22x22xf32, #tpu.memory_space<vmem>>, vector<1x16x16xf32>
      %71 = vector.shape_cast %70 : vector<1x16x16xf32> to vector<16x16xf32>
      %72 = vector.broadcast %69 : f32 to vector<16x16xf32>
      %73 = arith.mulf %72, %71 : vector<16x16xf32>
      %74 = arith.addf %68, %73 : vector<16x16xf32>
      %c8 = arith.constant 8 : index
      %75 = memref.load %arg2[%c8] : memref<98xf32, #tpu.memory_space<smem>>
      %c0_55 = arith.constant 0 : index
      %c1_56 = arith.constant 1 : index
      %c1_57 = arith.constant 1 : index
      %76 = vector.load %arg7[%c0_55, %c1_56, %c1_57] : memref<2x22x22xf32, #tpu.memory_space<vmem>>, vector<1x16x16xf32>
      %77 = vector.shape_cast %76 : vector<1x16x16xf32> to vector<16x16xf32>
      %78 = vector.broadcast %75 : f32 to vector<16x16xf32>
      %79 = arith.mulf %78, %77 : vector<16x16xf32>
      %80 = arith.addf %74, %79 : vector<16x16xf32>
      %c9 = arith.constant 9 : index
      %81 = memref.load %arg2[%c9] : memref<98xf32, #tpu.memory_space<smem>>
      %c0_58 = arith.constant 0 : index
      %c1_59 = arith.constant 1 : index
      %c2_60 = arith.constant 2 : index
      %82 = vector.load %arg7[%c0_58, %c1_59, %c2_60] : memref<2x22x22xf32, #tpu.memory_space<vmem>>, vector<1x16x16xf32>
      %83 = vector.shape_cast %82 : vector<1x16x16xf32> to vector<16x16xf32>
      %84 = vector.broadcast %81 : f32 to vector<16x16xf32>
      %85 = arith.mulf %84, %83 : vector<16x16xf32>
      %86 = arith.addf %80, %85 : vector<16x16xf32>
      %c10 = arith.constant 10 : index
      %87 = memref.load %arg2[%c10] : memref<98xf32, #tpu.memory_space<smem>>
      %c0_61 = arith.constant 0 : index
      %c1_62 = arith.constant 1 : index
      %c3_63 = arith.constant 3 : index
      %88 = vector.load %arg7[%c0_61, %c1_62, %c3_63] : memref<2x22x22xf32, #tpu.memory_space<vmem>>, vector<1x16x16xf32>
      %89 = vector.shape_cast %88 : vector<1x16x16xf32> to vector<16x16xf32>
      %90 = vector.broadcast %87 : f32 to vector<16x16xf32>
      %91 = arith.mulf %90, %89 : vector<16x16xf32>
      %92 = arith.addf %86, %91 : vector<16x16xf32>
      %c11 = arith.constant 11 : index
      %93 = memref.load %arg2[%c11] : memref<98xf32, #tpu.memory_space<smem>>
      %c0_64 = arith.constant 0 : index
      %c1_65 = arith.constant 1 : index
      %c4_66 = arith.constant 4 : index
      %94 = vector.load %arg7[%c0_64, %c1_65, %c4_66] : memref<2x22x22xf32, #tpu.memory_space<vmem>>, vector<1x16x16xf32>
      %95 = vector.shape_cast %94 : vector<1x16x16xf32> to vector<16x16xf32>
      %96 = vector.broadcast %93 : f32 to vector<16x16xf32>
      %97 = arith.mulf %96, %95 : vector<16x16xf32>
      %98 = arith.addf %92, %97 : vector<16x16xf32>
      %c12 = arith.constant 12 : index
      %99 = memref.load %arg2[%c12] : memref<98xf32, #tpu.memory_space<smem>>
      %c0_67 = arith.constant 0 : index
      %c1_68 = arith.constant 1 : index
      %c5_69 = arith.constant 5 : index
      %100 = vector.load %arg7[%c0_67, %c1_68, %c5_69] : memref<2x22x22xf32, #tpu.memory_space<vmem>>, vector<1x16x16xf32>
      %101 = vector.shape_cast %100 : vector<1x16x16xf32> to vector<16x16xf32>
      %102 = vector.broadcast %99 : f32 to vector<16x16xf32>
      %103 = arith.mulf %102, %101 : vector<16x16xf32>
      %104 = arith.addf %98, %103 : vector<16x16xf32>
      %c13 = arith.constant 13 : index
      %105 = memref.load %arg2[%c13] : memref<98xf32, #tpu.memory_space<smem>>
      %c0_70 = arith.constant 0 : index
      %c1_71 = arith.constant 1 : index
      %c6_72 = arith.constant 6 : index
      %106 = vector.load %arg7[%c0_70, %c1_71, %c6_72] : memref<2x22x22xf32, #tpu.memory_space<vmem>>, vector<1x16x16xf32>
      %107 = vector.shape_cast %106 : vector<1x16x16xf32> to vector<16x16xf32>
      %108 = vector.broadcast %105 : f32 to vector<16x16xf32>
      %109 = arith.mulf %108, %107 : vector<16x16xf32>
      %110 = arith.addf %104, %109 : vector<16x16xf32>
      %c14 = arith.constant 14 : index
      %111 = memref.load %arg2[%c14] : memref<98xf32, #tpu.memory_space<smem>>
      %c0_73 = arith.constant 0 : index
      %c2_74 = arith.constant 2 : index
      %c0_75 = arith.constant 0 : index
      %112 = vector.load %arg7[%c0_73, %c2_74, %c0_75] : memref<2x22x22xf32, #tpu.memory_space<vmem>>, vector<1x16x16xf32>
      %113 = vector.shape_cast %112 : vector<1x16x16xf32> to vector<16x16xf32>
      %114 = vector.broadcast %111 : f32 to vector<16x16xf32>
      %115 = arith.mulf %114, %113 : vector<16x16xf32>
      %116 = arith.addf %110, %115 : vector<16x16xf32>
      %c15 = arith.constant 15 : index
      %117 = memref.load %arg2[%c15] : memref<98xf32, #tpu.memory_space<smem>>
      %c0_76 = arith.constant 0 : index
      %c2_77 = arith.constant 2 : index
      %c1_78 = arith.constant 1 : index
      %118 = vector.load %arg7[%c0_76, %c2_77, %c1_78] : memref<2x22x22xf32, #tpu.memory_space<vmem>>, vector<1x16x16xf32>
      %119 = vector.shape_cast %118 : vector<1x16x16xf32> to vector<16x16xf32>
      %120 = vector.broadcast %117 : f32 to vector<16x16xf32>
      %121 = arith.mulf %120, %119 : vector<16x16xf32>
      %122 = arith.addf %116, %121 : vector<16x16xf32>
      %c16 = arith.constant 16 : index
      %123 = memref.load %arg2[%c16] : memref<98xf32, #tpu.memory_space<smem>>
      %c0_79 = arith.constant 0 : index
      %c2_80 = arith.constant 2 : index
      %c2_81 = arith.constant 2 : index
      %124 = vector.load %arg7[%c0_79, %c2_80, %c2_81] : memref<2x22x22xf32, #tpu.memory_space<vmem>>, vector<1x16x16xf32>
      %125 = vector.shape_cast %124 : vector<1x16x16xf32> to vector<16x16xf32>
      %126 = vector.broadcast %123 : f32 to vector<16x16xf32>
      %127 = arith.mulf %126, %125 : vector<16x16xf32>
      %128 = arith.addf %122, %127 : vector<16x16xf32>
      %c17 = arith.constant 17 : index
      %129 = memref.load %arg2[%c17] : memref<98xf32, #tpu.memory_space<smem>>
      %c0_82 = arith.constant 0 : index
      %c2_83 = arith.constant 2 : index
      %c3_84 = arith.constant 3 : index
      %130 = vector.load %arg7[%c0_82, %c2_83, %c3_84] : memref<2x22x22xf32, #tpu.memory_space<vmem>>, vector<1x16x16xf32>
      %131 = vector.shape_cast %130 : vector<1x16x16xf32> to vector<16x16xf32>
      %132 = vector.broadcast %129 : f32 to vector<16x16xf32>
      %133 = arith.mulf %132, %131 : vector<16x16xf32>
      %134 = arith.addf %128, %133 : vector<16x16xf32>
      %c18 = arith.constant 18 : index
      %135 = memref.load %arg2[%c18] : memref<98xf32, #tpu.memory_space<smem>>
      %c0_85 = arith.constant 0 : index
      %c2_86 = arith.constant 2 : index
      %c4_87 = arith.constant 4 : index
      %136 = vector.load %arg7[%c0_85, %c2_86, %c4_87] : memref<2x22x22xf32, #tpu.memory_space<vmem>>, vector<1x16x16xf32>
      %137 = vector.shape_cast %136 : vector<1x16x16xf32> to vector<16x16xf32>
      %138 = vector.broadcast %135 : f32 to vector<16x16xf32>
      %139 = arith.mulf %138, %137 : vector<16x16xf32>
      %140 = arith.addf %134, %139 : vector<16x16xf32>
      %c19 = arith.constant 19 : index
      %141 = memref.load %arg2[%c19] : memref<98xf32, #tpu.memory_space<smem>>
      %c0_88 = arith.constant 0 : index
      %c2_89 = arith.constant 2 : index
      %c5_90 = arith.constant 5 : index
      %142 = vector.load %arg7[%c0_88, %c2_89, %c5_90] : memref<2x22x22xf32, #tpu.memory_space<vmem>>, vector<1x16x16xf32>
      %143 = vector.shape_cast %142 : vector<1x16x16xf32> to vector<16x16xf32>
      %144 = vector.broadcast %141 : f32 to vector<16x16xf32>
      %145 = arith.mulf %144, %143 : vector<16x16xf32>
      %146 = arith.addf %140, %145 : vector<16x16xf32>
      %c20 = arith.constant 20 : index
      %147 = memref.load %arg2[%c20] : memref<98xf32, #tpu.memory_space<smem>>
      %c0_91 = arith.constant 0 : index
      %c2_92 = arith.constant 2 : index
      %c6_93 = arith.constant 6 : index
      %148 = vector.load %arg7[%c0_91, %c2_92, %c6_93] : memref<2x22x22xf32, #tpu.memory_space<vmem>>, vector<1x16x16xf32>
      %149 = vector.shape_cast %148 : vector<1x16x16xf32> to vector<16x16xf32>
      %150 = vector.broadcast %147 : f32 to vector<16x16xf32>
      %151 = arith.mulf %150, %149 : vector<16x16xf32>
      %152 = arith.addf %146, %151 : vector<16x16xf32>
      %c21 = arith.constant 21 : index
      %153 = memref.load %arg2[%c21] : memref<98xf32, #tpu.memory_space<smem>>
      %c0_94 = arith.constant 0 : index
      %c3_95 = arith.constant 3 : index
      %c0_96 = arith.constant 0 : index
      %154 = vector.load %arg7[%c0_94, %c3_95, %c0_96] : memref<2x22x22xf32, #tpu.memory_space<vmem>>, vector<1x16x16xf32>
      %155 = vector.shape_cast %154 : vector<1x16x16xf32> to vector<16x16xf32>
      %156 = vector.broadcast %153 : f32 to vector<16x16xf32>
      %157 = arith.mulf %156, %155 : vector<16x16xf32>
      %158 = arith.addf %152, %157 : vector<16x16xf32>
      %c22 = arith.constant 22 : index
      %159 = memref.load %arg2[%c22] : memref<98xf32, #tpu.memory_space<smem>>
      %c0_97 = arith.constant 0 : index
      %c3_98 = arith.constant 3 : index
      %c1_99 = arith.constant 1 : index
      %160 = vector.load %arg7[%c0_97, %c3_98, %c1_99] : memref<2x22x22xf32, #tpu.memory_space<vmem>>, vector<1x16x16xf32>
      %161 = vector.shape_cast %160 : vector<1x16x16xf32> to vector<16x16xf32>
      %162 = vector.broadcast %159 : f32 to vector<16x16xf32>
      %163 = arith.mulf %162, %161 : vector<16x16xf32>
      %164 = arith.addf %158, %163 : vector<16x16xf32>
      %c23 = arith.constant 23 : index
      %165 = memref.load %arg2[%c23] : memref<98xf32, #tpu.memory_space<smem>>
      %c0_100 = arith.constant 0 : index
      %c3_101 = arith.constant 3 : index
      %c2_102 = arith.constant 2 : index
      %166 = vector.load %arg7[%c0_100, %c3_101, %c2_102] : memref<2x22x22xf32, #tpu.memory_space<vmem>>, vector<1x16x16xf32>
      %167 = vector.shape_cast %166 : vector<1x16x16xf32> to vector<16x16xf32>
      %168 = vector.broadcast %165 : f32 to vector<16x16xf32>
      %169 = arith.mulf %168, %167 : vector<16x16xf32>
      %170 = arith.addf %164, %169 : vector<16x16xf32>
      %c24 = arith.constant 24 : index
      %171 = memref.load %arg2[%c24] : memref<98xf32, #tpu.memory_space<smem>>
      %c0_103 = arith.constant 0 : index
      %c3_104 = arith.constant 3 : index
      %c3_105 = arith.constant 3 : index
      %172 = vector.load %arg7[%c0_103, %c3_104, %c3_105] : memref<2x22x22xf32, #tpu.memory_space<vmem>>, vector<1x16x16xf32>
      %173 = vector.shape_cast %172 : vector<1x16x16xf32> to vector<16x16xf32>
      %174 = vector.broadcast %171 : f32 to vector<16x16xf32>
      %175 = arith.mulf %174, %173 : vector<16x16xf32>
      %176 = arith.addf %170, %175 : vector<16x16xf32>
      %c25 = arith.constant 25 : index
      %177 = memref.load %arg2[%c25] : memref<98xf32, #tpu.memory_space<smem>>
      %c0_106 = arith.constant 0 : index
      %c3_107 = arith.constant 3 : index
      %c4_108 = arith.constant 4 : index
      %178 = vector.load %arg7[%c0_106, %c3_107, %c4_108] : memref<2x22x22xf32, #tpu.memory_space<vmem>>, vector<1x16x16xf32>
      %179 = vector.shape_cast %178 : vector<1x16x16xf32> to vector<16x16xf32>
      %180 = vector.broadcast %177 : f32 to vector<16x16xf32>
      %181 = arith.mulf %180, %179 : vector<16x16xf32>
      %182 = arith.addf %176, %181 : vector<16x16xf32>
      %c26 = arith.constant 26 : index
      %183 = memref.load %arg2[%c26] : memref<98xf32, #tpu.memory_space<smem>>
      %c0_109 = arith.constant 0 : index
      %c3_110 = arith.constant 3 : index
      %c5_111 = arith.constant 5 : index
      %184 = vector.load %arg7[%c0_109, %c3_110, %c5_111] : memref<2x22x22xf32, #tpu.memory_space<vmem>>, vector<1x16x16xf32>
      %185 = vector.shape_cast %184 : vector<1x16x16xf32> to vector<16x16xf32>
      %186 = vector.broadcast %183 : f32 to vector<16x16xf32>
      %187 = arith.mulf %186, %185 : vector<16x16xf32>
      %188 = arith.addf %182, %187 : vector<16x16xf32>
      %c27 = arith.constant 27 : index
      %189 = memref.load %arg2[%c27] : memref<98xf32, #tpu.memory_space<smem>>
      %c0_112 = arith.constant 0 : index
      %c3_113 = arith.constant 3 : index
      %c6_114 = arith.constant 6 : index
      %190 = vector.load %arg7[%c0_112, %c3_113, %c6_114] : memref<2x22x22xf32, #tpu.memory_space<vmem>>, vector<1x16x16xf32>
      %191 = vector.shape_cast %190 : vector<1x16x16xf32> to vector<16x16xf32>
      %192 = vector.broadcast %189 : f32 to vector<16x16xf32>
      %193 = arith.mulf %192, %191 : vector<16x16xf32>
      %194 = arith.addf %188, %193 : vector<16x16xf32>
      %c28 = arith.constant 28 : index
      %195 = memref.load %arg2[%c28] : memref<98xf32, #tpu.memory_space<smem>>
      %c0_115 = arith.constant 0 : index
      %c4_116 = arith.constant 4 : index
      %c0_117 = arith.constant 0 : index
      %196 = vector.load %arg7[%c0_115, %c4_116, %c0_117] : memref<2x22x22xf32, #tpu.memory_space<vmem>>, vector<1x16x16xf32>
      %197 = vector.shape_cast %196 : vector<1x16x16xf32> to vector<16x16xf32>
      %198 = vector.broadcast %195 : f32 to vector<16x16xf32>
      %199 = arith.mulf %198, %197 : vector<16x16xf32>
      %200 = arith.addf %194, %199 : vector<16x16xf32>
      %c29 = arith.constant 29 : index
      %201 = memref.load %arg2[%c29] : memref<98xf32, #tpu.memory_space<smem>>
      %c0_118 = arith.constant 0 : index
      %c4_119 = arith.constant 4 : index
      %c1_120 = arith.constant 1 : index
      %202 = vector.load %arg7[%c0_118, %c4_119, %c1_120] : memref<2x22x22xf32, #tpu.memory_space<vmem>>, vector<1x16x16xf32>
      %203 = vector.shape_cast %202 : vector<1x16x16xf32> to vector<16x16xf32>
      %204 = vector.broadcast %201 : f32 to vector<16x16xf32>
      %205 = arith.mulf %204, %203 : vector<16x16xf32>
      %206 = arith.addf %200, %205 : vector<16x16xf32>
      %c30 = arith.constant 30 : index
      %207 = memref.load %arg2[%c30] : memref<98xf32, #tpu.memory_space<smem>>
      %c0_121 = arith.constant 0 : index
      %c4_122 = arith.constant 4 : index
      %c2_123 = arith.constant 2 : index
      %208 = vector.load %arg7[%c0_121, %c4_122, %c2_123] : memref<2x22x22xf32, #tpu.memory_space<vmem>>, vector<1x16x16xf32>
      %209 = vector.shape_cast %208 : vector<1x16x16xf32> to vector<16x16xf32>
      %210 = vector.broadcast %207 : f32 to vector<16x16xf32>
      %211 = arith.mulf %210, %209 : vector<16x16xf32>
      %212 = arith.addf %206, %211 : vector<16x16xf32>
      %c31 = arith.constant 31 : index
      %213 = memref.load %arg2[%c31] : memref<98xf32, #tpu.memory_space<smem>>
      %c0_124 = arith.constant 0 : index
      %c4_125 = arith.constant 4 : index
      %c3_126 = arith.constant 3 : index
      %214 = vector.load %arg7[%c0_124, %c4_125, %c3_126] : memref<2x22x22xf32, #tpu.memory_space<vmem>>, vector<1x16x16xf32>
      %215 = vector.shape_cast %214 : vector<1x16x16xf32> to vector<16x16xf32>
      %216 = vector.broadcast %213 : f32 to vector<16x16xf32>
      %217 = arith.mulf %216, %215 : vector<16x16xf32>
      %218 = arith.addf %212, %217 : vector<16x16xf32>
      %c32 = arith.constant 32 : index
      %219 = memref.load %arg2[%c32] : memref<98xf32, #tpu.memory_space<smem>>
      %c0_127 = arith.constant 0 : index
      %c4_128 = arith.constant 4 : index
      %c4_129 = arith.constant 4 : index
      %220 = vector.load %arg7[%c0_127, %c4_128, %c4_129] : memref<2x22x22xf32, #tpu.memory_space<vmem>>, vector<1x16x16xf32>
      %221 = vector.shape_cast %220 : vector<1x16x16xf32> to vector<16x16xf32>
      %222 = vector.broadcast %219 : f32 to vector<16x16xf32>
      %223 = arith.mulf %222, %221 : vector<16x16xf32>
      %224 = arith.addf %218, %223 : vector<16x16xf32>
      %c33 = arith.constant 33 : index
      %225 = memref.load %arg2[%c33] : memref<98xf32, #tpu.memory_space<smem>>
      %c0_130 = arith.constant 0 : index
      %c4_131 = arith.constant 4 : index
      %c5_132 = arith.constant 5 : index
      %226 = vector.load %arg7[%c0_130, %c4_131, %c5_132] : memref<2x22x22xf32, #tpu.memory_space<vmem>>, vector<1x16x16xf32>
      %227 = vector.shape_cast %226 : vector<1x16x16xf32> to vector<16x16xf32>
      %228 = vector.broadcast %225 : f32 to vector<16x16xf32>
      %229 = arith.mulf %228, %227 : vector<16x16xf32>
      %230 = arith.addf %224, %229 : vector<16x16xf32>
      %c34 = arith.constant 34 : index
      %231 = memref.load %arg2[%c34] : memref<98xf32, #tpu.memory_space<smem>>
      %c0_133 = arith.constant 0 : index
      %c4_134 = arith.constant 4 : index
      %c6_135 = arith.constant 6 : index
      %232 = vector.load %arg7[%c0_133, %c4_134, %c6_135] : memref<2x22x22xf32, #tpu.memory_space<vmem>>, vector<1x16x16xf32>
      %233 = vector.shape_cast %232 : vector<1x16x16xf32> to vector<16x16xf32>
      %234 = vector.broadcast %231 : f32 to vector<16x16xf32>
      %235 = arith.mulf %234, %233 : vector<16x16xf32>
      %236 = arith.addf %230, %235 : vector<16x16xf32>
      %c35 = arith.constant 35 : index
      %237 = memref.load %arg2[%c35] : memref<98xf32, #tpu.memory_space<smem>>
      %c0_136 = arith.constant 0 : index
      %c5_137 = arith.constant 5 : index
      %c0_138 = arith.constant 0 : index
      %238 = vector.load %arg7[%c0_136, %c5_137, %c0_138] : memref<2x22x22xf32, #tpu.memory_space<vmem>>, vector<1x16x16xf32>
      %239 = vector.shape_cast %238 : vector<1x16x16xf32> to vector<16x16xf32>
      %240 = vector.broadcast %237 : f32 to vector<16x16xf32>
      %241 = arith.mulf %240, %239 : vector<16x16xf32>
      %242 = arith.addf %236, %241 : vector<16x16xf32>
      %c36 = arith.constant 36 : index
      %243 = memref.load %arg2[%c36] : memref<98xf32, #tpu.memory_space<smem>>
      %c0_139 = arith.constant 0 : index
      %c5_140 = arith.constant 5 : index
      %c1_141 = arith.constant 1 : index
      %244 = vector.load %arg7[%c0_139, %c5_140, %c1_141] : memref<2x22x22xf32, #tpu.memory_space<vmem>>, vector<1x16x16xf32>
      %245 = vector.shape_cast %244 : vector<1x16x16xf32> to vector<16x16xf32>
      %246 = vector.broadcast %243 : f32 to vector<16x16xf32>
      %247 = arith.mulf %246, %245 : vector<16x16xf32>
      %248 = arith.addf %242, %247 : vector<16x16xf32>
      %c37 = arith.constant 37 : index
      %249 = memref.load %arg2[%c37] : memref<98xf32, #tpu.memory_space<smem>>
      %c0_142 = arith.constant 0 : index
      %c5_143 = arith.constant 5 : index
      %c2_144 = arith.constant 2 : index
      %250 = vector.load %arg7[%c0_142, %c5_143, %c2_144] : memref<2x22x22xf32, #tpu.memory_space<vmem>>, vector<1x16x16xf32>
      %251 = vector.shape_cast %250 : vector<1x16x16xf32> to vector<16x16xf32>
      %252 = vector.broadcast %249 : f32 to vector<16x16xf32>
      %253 = arith.mulf %252, %251 : vector<16x16xf32>
      %254 = arith.addf %248, %253 : vector<16x16xf32>
      %c38 = arith.constant 38 : index
      %255 = memref.load %arg2[%c38] : memref<98xf32, #tpu.memory_space<smem>>
      %c0_145 = arith.constant 0 : index
      %c5_146 = arith.constant 5 : index
      %c3_147 = arith.constant 3 : index
      %256 = vector.load %arg7[%c0_145, %c5_146, %c3_147] : memref<2x22x22xf32, #tpu.memory_space<vmem>>, vector<1x16x16xf32>
      %257 = vector.shape_cast %256 : vector<1x16x16xf32> to vector<16x16xf32>
      %258 = vector.broadcast %255 : f32 to vector<16x16xf32>
      %259 = arith.mulf %258, %257 : vector<16x16xf32>
      %260 = arith.addf %254, %259 : vector<16x16xf32>
      %c39 = arith.constant 39 : index
      %261 = memref.load %arg2[%c39] : memref<98xf32, #tpu.memory_space<smem>>
      %c0_148 = arith.constant 0 : index
      %c5_149 = arith.constant 5 : index
      %c4_150 = arith.constant 4 : index
      %262 = vector.load %arg7[%c0_148, %c5_149, %c4_150] : memref<2x22x22xf32, #tpu.memory_space<vmem>>, vector<1x16x16xf32>
      %263 = vector.shape_cast %262 : vector<1x16x16xf32> to vector<16x16xf32>
      %264 = vector.broadcast %261 : f32 to vector<16x16xf32>
      %265 = arith.mulf %264, %263 : vector<16x16xf32>
      %266 = arith.addf %260, %265 : vector<16x16xf32>
      %c40 = arith.constant 40 : index
      %267 = memref.load %arg2[%c40] : memref<98xf32, #tpu.memory_space<smem>>
      %c0_151 = arith.constant 0 : index
      %c5_152 = arith.constant 5 : index
      %c5_153 = arith.constant 5 : index
      %268 = vector.load %arg7[%c0_151, %c5_152, %c5_153] : memref<2x22x22xf32, #tpu.memory_space<vmem>>, vector<1x16x16xf32>
      %269 = vector.shape_cast %268 : vector<1x16x16xf32> to vector<16x16xf32>
      %270 = vector.broadcast %267 : f32 to vector<16x16xf32>
      %271 = arith.mulf %270, %269 : vector<16x16xf32>
      %272 = arith.addf %266, %271 : vector<16x16xf32>
      %c41 = arith.constant 41 : index
      %273 = memref.load %arg2[%c41] : memref<98xf32, #tpu.memory_space<smem>>
      %c0_154 = arith.constant 0 : index
      %c5_155 = arith.constant 5 : index
      %c6_156 = arith.constant 6 : index
      %274 = vector.load %arg7[%c0_154, %c5_155, %c6_156] : memref<2x22x22xf32, #tpu.memory_space<vmem>>, vector<1x16x16xf32>
      %275 = vector.shape_cast %274 : vector<1x16x16xf32> to vector<16x16xf32>
      %276 = vector.broadcast %273 : f32 to vector<16x16xf32>
      %277 = arith.mulf %276, %275 : vector<16x16xf32>
      %278 = arith.addf %272, %277 : vector<16x16xf32>
      %c42 = arith.constant 42 : index
      %279 = memref.load %arg2[%c42] : memref<98xf32, #tpu.memory_space<smem>>
      %c0_157 = arith.constant 0 : index
      %c6_158 = arith.constant 6 : index
      %c0_159 = arith.constant 0 : index
      %280 = vector.load %arg7[%c0_157, %c6_158, %c0_159] : memref<2x22x22xf32, #tpu.memory_space<vmem>>, vector<1x16x16xf32>
      %281 = vector.shape_cast %280 : vector<1x16x16xf32> to vector<16x16xf32>
      %282 = vector.broadcast %279 : f32 to vector<16x16xf32>
      %283 = arith.mulf %282, %281 : vector<16x16xf32>
      %284 = arith.addf %278, %283 : vector<16x16xf32>
      %c43 = arith.constant 43 : index
      %285 = memref.load %arg2[%c43] : memref<98xf32, #tpu.memory_space<smem>>
      %c0_160 = arith.constant 0 : index
      %c6_161 = arith.constant 6 : index
      %c1_162 = arith.constant 1 : index
      %286 = vector.load %arg7[%c0_160, %c6_161, %c1_162] : memref<2x22x22xf32, #tpu.memory_space<vmem>>, vector<1x16x16xf32>
      %287 = vector.shape_cast %286 : vector<1x16x16xf32> to vector<16x16xf32>
      %288 = vector.broadcast %285 : f32 to vector<16x16xf32>
      %289 = arith.mulf %288, %287 : vector<16x16xf32>
      %290 = arith.addf %284, %289 : vector<16x16xf32>
      %c44 = arith.constant 44 : index
      %291 = memref.load %arg2[%c44] : memref<98xf32, #tpu.memory_space<smem>>
      %c0_163 = arith.constant 0 : index
      %c6_164 = arith.constant 6 : index
      %c2_165 = arith.constant 2 : index
      %292 = vector.load %arg7[%c0_163, %c6_164, %c2_165] : memref<2x22x22xf32, #tpu.memory_space<vmem>>, vector<1x16x16xf32>
      %293 = vector.shape_cast %292 : vector<1x16x16xf32> to vector<16x16xf32>
      %294 = vector.broadcast %291 : f32 to vector<16x16xf32>
      %295 = arith.mulf %294, %293 : vector<16x16xf32>
      %296 = arith.addf %290, %295 : vector<16x16xf32>
      %c45 = arith.constant 45 : index
      %297 = memref.load %arg2[%c45] : memref<98xf32, #tpu.memory_space<smem>>
      %c0_166 = arith.constant 0 : index
      %c6_167 = arith.constant 6 : index
      %c3_168 = arith.constant 3 : index
      %298 = vector.load %arg7[%c0_166, %c6_167, %c3_168] : memref<2x22x22xf32, #tpu.memory_space<vmem>>, vector<1x16x16xf32>
      %299 = vector.shape_cast %298 : vector<1x16x16xf32> to vector<16x16xf32>
      %300 = vector.broadcast %297 : f32 to vector<16x16xf32>
      %301 = arith.mulf %300, %299 : vector<16x16xf32>
      %302 = arith.addf %296, %301 : vector<16x16xf32>
      %c46 = arith.constant 46 : index
      %303 = memref.load %arg2[%c46] : memref<98xf32, #tpu.memory_space<smem>>
      %c0_169 = arith.constant 0 : index
      %c6_170 = arith.constant 6 : index
      %c4_171 = arith.constant 4 : index
      %304 = vector.load %arg7[%c0_169, %c6_170, %c4_171] : memref<2x22x22xf32, #tpu.memory_space<vmem>>, vector<1x16x16xf32>
      %305 = vector.shape_cast %304 : vector<1x16x16xf32> to vector<16x16xf32>
      %306 = vector.broadcast %303 : f32 to vector<16x16xf32>
      %307 = arith.mulf %306, %305 : vector<16x16xf32>
      %308 = arith.addf %302, %307 : vector<16x16xf32>
      %c47 = arith.constant 47 : index
      %309 = memref.load %arg2[%c47] : memref<98xf32, #tpu.memory_space<smem>>
      %c0_172 = arith.constant 0 : index
      %c6_173 = arith.constant 6 : index
      %c5_174 = arith.constant 5 : index
      %310 = vector.load %arg7[%c0_172, %c6_173, %c5_174] : memref<2x22x22xf32, #tpu.memory_space<vmem>>, vector<1x16x16xf32>
      %311 = vector.shape_cast %310 : vector<1x16x16xf32> to vector<16x16xf32>
      %312 = vector.broadcast %309 : f32 to vector<16x16xf32>
      %313 = arith.mulf %312, %311 : vector<16x16xf32>
      %314 = arith.addf %308, %313 : vector<16x16xf32>
      %c48 = arith.constant 48 : index
      %315 = memref.load %arg2[%c48] : memref<98xf32, #tpu.memory_space<smem>>
      %c0_175 = arith.constant 0 : index
      %c6_176 = arith.constant 6 : index
      %c6_177 = arith.constant 6 : index
      %316 = vector.load %arg7[%c0_175, %c6_176, %c6_177] : memref<2x22x22xf32, #tpu.memory_space<vmem>>, vector<1x16x16xf32>
      %317 = vector.shape_cast %316 : vector<1x16x16xf32> to vector<16x16xf32>
      %318 = vector.broadcast %315 : f32 to vector<16x16xf32>
      %319 = arith.mulf %318, %317 : vector<16x16xf32>
      %320 = arith.addf %314, %319 : vector<16x16xf32>
      %c49 = arith.constant 49 : index
      %321 = memref.load %arg2[%c49] : memref<98xf32, #tpu.memory_space<smem>>
      %c1_178 = arith.constant 1 : index
      %c0_179 = arith.constant 0 : index
      %c0_180 = arith.constant 0 : index
      %322 = vector.load %arg7[%c1_178, %c0_179, %c0_180] : memref<2x22x22xf32, #tpu.memory_space<vmem>>, vector<1x16x16xf32>
      %323 = vector.shape_cast %322 : vector<1x16x16xf32> to vector<16x16xf32>
      %324 = vector.broadcast %321 : f32 to vector<16x16xf32>
      %325 = arith.mulf %324, %323 : vector<16x16xf32>
      %326 = arith.addf %320, %325 : vector<16x16xf32>
      %c50 = arith.constant 50 : index
      %327 = memref.load %arg2[%c50] : memref<98xf32, #tpu.memory_space<smem>>
      %c1_181 = arith.constant 1 : index
      %c0_182 = arith.constant 0 : index
      %c1_183 = arith.constant 1 : index
      %328 = vector.load %arg7[%c1_181, %c0_182, %c1_183] : memref<2x22x22xf32, #tpu.memory_space<vmem>>, vector<1x16x16xf32>
      %329 = vector.shape_cast %328 : vector<1x16x16xf32> to vector<16x16xf32>
      %330 = vector.broadcast %327 : f32 to vector<16x16xf32>
      %331 = arith.mulf %330, %329 : vector<16x16xf32>
      %332 = arith.addf %326, %331 : vector<16x16xf32>
      %c51 = arith.constant 51 : index
      %333 = memref.load %arg2[%c51] : memref<98xf32, #tpu.memory_space<smem>>
      %c1_184 = arith.constant 1 : index
      %c0_185 = arith.constant 0 : index
      %c2_186 = arith.constant 2 : index
      %334 = vector.load %arg7[%c1_184, %c0_185, %c2_186] : memref<2x22x22xf32, #tpu.memory_space<vmem>>, vector<1x16x16xf32>
      %335 = vector.shape_cast %334 : vector<1x16x16xf32> to vector<16x16xf32>
      %336 = vector.broadcast %333 : f32 to vector<16x16xf32>
      %337 = arith.mulf %336, %335 : vector<16x16xf32>
      %338 = arith.addf %332, %337 : vector<16x16xf32>
      %c52 = arith.constant 52 : index
      %339 = memref.load %arg2[%c52] : memref<98xf32, #tpu.memory_space<smem>>
      %c1_187 = arith.constant 1 : index
      %c0_188 = arith.constant 0 : index
      %c3_189 = arith.constant 3 : index
      %340 = vector.load %arg7[%c1_187, %c0_188, %c3_189] : memref<2x22x22xf32, #tpu.memory_space<vmem>>, vector<1x16x16xf32>
      %341 = vector.shape_cast %340 : vector<1x16x16xf32> to vector<16x16xf32>
      %342 = vector.broadcast %339 : f32 to vector<16x16xf32>
      %343 = arith.mulf %342, %341 : vector<16x16xf32>
      %344 = arith.addf %338, %343 : vector<16x16xf32>
      %c53 = arith.constant 53 : index
      %345 = memref.load %arg2[%c53] : memref<98xf32, #tpu.memory_space<smem>>
      %c1_190 = arith.constant 1 : index
      %c0_191 = arith.constant 0 : index
      %c4_192 = arith.constant 4 : index
      %346 = vector.load %arg7[%c1_190, %c0_191, %c4_192] : memref<2x22x22xf32, #tpu.memory_space<vmem>>, vector<1x16x16xf32>
      %347 = vector.shape_cast %346 : vector<1x16x16xf32> to vector<16x16xf32>
      %348 = vector.broadcast %345 : f32 to vector<16x16xf32>
      %349 = arith.mulf %348, %347 : vector<16x16xf32>
      %350 = arith.addf %344, %349 : vector<16x16xf32>
      %c54 = arith.constant 54 : index
      %351 = memref.load %arg2[%c54] : memref<98xf32, #tpu.memory_space<smem>>
      %c1_193 = arith.constant 1 : index
      %c0_194 = arith.constant 0 : index
      %c5_195 = arith.constant 5 : index
      %352 = vector.load %arg7[%c1_193, %c0_194, %c5_195] : memref<2x22x22xf32, #tpu.memory_space<vmem>>, vector<1x16x16xf32>
      %353 = vector.shape_cast %352 : vector<1x16x16xf32> to vector<16x16xf32>
      %354 = vector.broadcast %351 : f32 to vector<16x16xf32>
      %355 = arith.mulf %354, %353 : vector<16x16xf32>
      %356 = arith.addf %350, %355 : vector<16x16xf32>
      %c55 = arith.constant 55 : index
      %357 = memref.load %arg2[%c55] : memref<98xf32, #tpu.memory_space<smem>>
      %c1_196 = arith.constant 1 : index
      %c0_197 = arith.constant 0 : index
      %c6_198 = arith.constant 6 : index
      %358 = vector.load %arg7[%c1_196, %c0_197, %c6_198] : memref<2x22x22xf32, #tpu.memory_space<vmem>>, vector<1x16x16xf32>
      %359 = vector.shape_cast %358 : vector<1x16x16xf32> to vector<16x16xf32>
      %360 = vector.broadcast %357 : f32 to vector<16x16xf32>
      %361 = arith.mulf %360, %359 : vector<16x16xf32>
      %362 = arith.addf %356, %361 : vector<16x16xf32>
      %c56 = arith.constant 56 : index
      %363 = memref.load %arg2[%c56] : memref<98xf32, #tpu.memory_space<smem>>
      %c1_199 = arith.constant 1 : index
      %c1_200 = arith.constant 1 : index
      %c0_201 = arith.constant 0 : index
      %364 = vector.load %arg7[%c1_199, %c1_200, %c0_201] : memref<2x22x22xf32, #tpu.memory_space<vmem>>, vector<1x16x16xf32>
      %365 = vector.shape_cast %364 : vector<1x16x16xf32> to vector<16x16xf32>
      %366 = vector.broadcast %363 : f32 to vector<16x16xf32>
      %367 = arith.mulf %366, %365 : vector<16x16xf32>
      %368 = arith.addf %362, %367 : vector<16x16xf32>
      %c57 = arith.constant 57 : index
      %369 = memref.load %arg2[%c57] : memref<98xf32, #tpu.memory_space<smem>>
      %c1_202 = arith.constant 1 : index
      %c1_203 = arith.constant 1 : index
      %c1_204 = arith.constant 1 : index
      %370 = vector.load %arg7[%c1_202, %c1_203, %c1_204] : memref<2x22x22xf32, #tpu.memory_space<vmem>>, vector<1x16x16xf32>
      %371 = vector.shape_cast %370 : vector<1x16x16xf32> to vector<16x16xf32>
      %372 = vector.broadcast %369 : f32 to vector<16x16xf32>
      %373 = arith.mulf %372, %371 : vector<16x16xf32>
      %374 = arith.addf %368, %373 : vector<16x16xf32>
      %c58 = arith.constant 58 : index
      %375 = memref.load %arg2[%c58] : memref<98xf32, #tpu.memory_space<smem>>
      %c1_205 = arith.constant 1 : index
      %c1_206 = arith.constant 1 : index
      %c2_207 = arith.constant 2 : index
      %376 = vector.load %arg7[%c1_205, %c1_206, %c2_207] : memref<2x22x22xf32, #tpu.memory_space<vmem>>, vector<1x16x16xf32>
      %377 = vector.shape_cast %376 : vector<1x16x16xf32> to vector<16x16xf32>
      %378 = vector.broadcast %375 : f32 to vector<16x16xf32>
      %379 = arith.mulf %378, %377 : vector<16x16xf32>
      %380 = arith.addf %374, %379 : vector<16x16xf32>
      %c59 = arith.constant 59 : index
      %381 = memref.load %arg2[%c59] : memref<98xf32, #tpu.memory_space<smem>>
      %c1_208 = arith.constant 1 : index
      %c1_209 = arith.constant 1 : index
      %c3_210 = arith.constant 3 : index
      %382 = vector.load %arg7[%c1_208, %c1_209, %c3_210] : memref<2x22x22xf32, #tpu.memory_space<vmem>>, vector<1x16x16xf32>
      %383 = vector.shape_cast %382 : vector<1x16x16xf32> to vector<16x16xf32>
      %384 = vector.broadcast %381 : f32 to vector<16x16xf32>
      %385 = arith.mulf %384, %383 : vector<16x16xf32>
      %386 = arith.addf %380, %385 : vector<16x16xf32>
      %c60 = arith.constant 60 : index
      %387 = memref.load %arg2[%c60] : memref<98xf32, #tpu.memory_space<smem>>
      %c1_211 = arith.constant 1 : index
      %c1_212 = arith.constant 1 : index
      %c4_213 = arith.constant 4 : index
      %388 = vector.load %arg7[%c1_211, %c1_212, %c4_213] : memref<2x22x22xf32, #tpu.memory_space<vmem>>, vector<1x16x16xf32>
      %389 = vector.shape_cast %388 : vector<1x16x16xf32> to vector<16x16xf32>
      %390 = vector.broadcast %387 : f32 to vector<16x16xf32>
      %391 = arith.mulf %390, %389 : vector<16x16xf32>
      %392 = arith.addf %386, %391 : vector<16x16xf32>
      %c61 = arith.constant 61 : index
      %393 = memref.load %arg2[%c61] : memref<98xf32, #tpu.memory_space<smem>>
      %c1_214 = arith.constant 1 : index
      %c1_215 = arith.constant 1 : index
      %c5_216 = arith.constant 5 : index
      %394 = vector.load %arg7[%c1_214, %c1_215, %c5_216] : memref<2x22x22xf32, #tpu.memory_space<vmem>>, vector<1x16x16xf32>
      %395 = vector.shape_cast %394 : vector<1x16x16xf32> to vector<16x16xf32>
      %396 = vector.broadcast %393 : f32 to vector<16x16xf32>
      %397 = arith.mulf %396, %395 : vector<16x16xf32>
      %398 = arith.addf %392, %397 : vector<16x16xf32>
      %c62 = arith.constant 62 : index
      %399 = memref.load %arg2[%c62] : memref<98xf32, #tpu.memory_space<smem>>
      %c1_217 = arith.constant 1 : index
      %c1_218 = arith.constant 1 : index
      %c6_219 = arith.constant 6 : index
      %400 = vector.load %arg7[%c1_217, %c1_218, %c6_219] : memref<2x22x22xf32, #tpu.memory_space<vmem>>, vector<1x16x16xf32>
      %401 = vector.shape_cast %400 : vector<1x16x16xf32> to vector<16x16xf32>
      %402 = vector.broadcast %399 : f32 to vector<16x16xf32>
      %403 = arith.mulf %402, %401 : vector<16x16xf32>
      %404 = arith.addf %398, %403 : vector<16x16xf32>
      %c63 = arith.constant 63 : index
      %405 = memref.load %arg2[%c63] : memref<98xf32, #tpu.memory_space<smem>>
      %c1_220 = arith.constant 1 : index
      %c2_221 = arith.constant 2 : index
      %c0_222 = arith.constant 0 : index
      %406 = vector.load %arg7[%c1_220, %c2_221, %c0_222] : memref<2x22x22xf32, #tpu.memory_space<vmem>>, vector<1x16x16xf32>
      %407 = vector.shape_cast %406 : vector<1x16x16xf32> to vector<16x16xf32>
      %408 = vector.broadcast %405 : f32 to vector<16x16xf32>
      %409 = arith.mulf %408, %407 : vector<16x16xf32>
      %410 = arith.addf %404, %409 : vector<16x16xf32>
      %c64 = arith.constant 64 : index
      %411 = memref.load %arg2[%c64] : memref<98xf32, #tpu.memory_space<smem>>
      %c1_223 = arith.constant 1 : index
      %c2_224 = arith.constant 2 : index
      %c1_225 = arith.constant 1 : index
      %412 = vector.load %arg7[%c1_223, %c2_224, %c1_225] : memref<2x22x22xf32, #tpu.memory_space<vmem>>, vector<1x16x16xf32>
      %413 = vector.shape_cast %412 : vector<1x16x16xf32> to vector<16x16xf32>
      %414 = vector.broadcast %411 : f32 to vector<16x16xf32>
      %415 = arith.mulf %414, %413 : vector<16x16xf32>
      %416 = arith.addf %410, %415 : vector<16x16xf32>
      %c65 = arith.constant 65 : index
      %417 = memref.load %arg2[%c65] : memref<98xf32, #tpu.memory_space<smem>>
      %c1_226 = arith.constant 1 : index
      %c2_227 = arith.constant 2 : index
      %c2_228 = arith.constant 2 : index
      %418 = vector.load %arg7[%c1_226, %c2_227, %c2_228] : memref<2x22x22xf32, #tpu.memory_space<vmem>>, vector<1x16x16xf32>
      %419 = vector.shape_cast %418 : vector<1x16x16xf32> to vector<16x16xf32>
      %420 = vector.broadcast %417 : f32 to vector<16x16xf32>
      %421 = arith.mulf %420, %419 : vector<16x16xf32>
      %422 = arith.addf %416, %421 : vector<16x16xf32>
      %c66 = arith.constant 66 : index
      %423 = memref.load %arg2[%c66] : memref<98xf32, #tpu.memory_space<smem>>
      %c1_229 = arith.constant 1 : index
      %c2_230 = arith.constant 2 : index
      %c3_231 = arith.constant 3 : index
      %424 = vector.load %arg7[%c1_229, %c2_230, %c3_231] : memref<2x22x22xf32, #tpu.memory_space<vmem>>, vector<1x16x16xf32>
      %425 = vector.shape_cast %424 : vector<1x16x16xf32> to vector<16x16xf32>
      %426 = vector.broadcast %423 : f32 to vector<16x16xf32>
      %427 = arith.mulf %426, %425 : vector<16x16xf32>
      %428 = arith.addf %422, %427 : vector<16x16xf32>
      %c67 = arith.constant 67 : index
      %429 = memref.load %arg2[%c67] : memref<98xf32, #tpu.memory_space<smem>>
      %c1_232 = arith.constant 1 : index
      %c2_233 = arith.constant 2 : index
      %c4_234 = arith.constant 4 : index
      %430 = vector.load %arg7[%c1_232, %c2_233, %c4_234] : memref<2x22x22xf32, #tpu.memory_space<vmem>>, vector<1x16x16xf32>
      %431 = vector.shape_cast %430 : vector<1x16x16xf32> to vector<16x16xf32>
      %432 = vector.broadcast %429 : f32 to vector<16x16xf32>
      %433 = arith.mulf %432, %431 : vector<16x16xf32>
      %434 = arith.addf %428, %433 : vector<16x16xf32>
      %c68 = arith.constant 68 : index
      %435 = memref.load %arg2[%c68] : memref<98xf32, #tpu.memory_space<smem>>
      %c1_235 = arith.constant 1 : index
      %c2_236 = arith.constant 2 : index
      %c5_237 = arith.constant 5 : index
      %436 = vector.load %arg7[%c1_235, %c2_236, %c5_237] : memref<2x22x22xf32, #tpu.memory_space<vmem>>, vector<1x16x16xf32>
      %437 = vector.shape_cast %436 : vector<1x16x16xf32> to vector<16x16xf32>
      %438 = vector.broadcast %435 : f32 to vector<16x16xf32>
      %439 = arith.mulf %438, %437 : vector<16x16xf32>
      %440 = arith.addf %434, %439 : vector<16x16xf32>
      %c69 = arith.constant 69 : index
      %441 = memref.load %arg2[%c69] : memref<98xf32, #tpu.memory_space<smem>>
      %c1_238 = arith.constant 1 : index
      %c2_239 = arith.constant 2 : index
      %c6_240 = arith.constant 6 : index
      %442 = vector.load %arg7[%c1_238, %c2_239, %c6_240] : memref<2x22x22xf32, #tpu.memory_space<vmem>>, vector<1x16x16xf32>
      %443 = vector.shape_cast %442 : vector<1x16x16xf32> to vector<16x16xf32>
      %444 = vector.broadcast %441 : f32 to vector<16x16xf32>
      %445 = arith.mulf %444, %443 : vector<16x16xf32>
      %446 = arith.addf %440, %445 : vector<16x16xf32>
      %c70 = arith.constant 70 : index
      %447 = memref.load %arg2[%c70] : memref<98xf32, #tpu.memory_space<smem>>
      %c1_241 = arith.constant 1 : index
      %c3_242 = arith.constant 3 : index
      %c0_243 = arith.constant 0 : index
      %448 = vector.load %arg7[%c1_241, %c3_242, %c0_243] : memref<2x22x22xf32, #tpu.memory_space<vmem>>, vector<1x16x16xf32>
      %449 = vector.shape_cast %448 : vector<1x16x16xf32> to vector<16x16xf32>
      %450 = vector.broadcast %447 : f32 to vector<16x16xf32>
      %451 = arith.mulf %450, %449 : vector<16x16xf32>
      %452 = arith.addf %446, %451 : vector<16x16xf32>
      %c71 = arith.constant 71 : index
      %453 = memref.load %arg2[%c71] : memref<98xf32, #tpu.memory_space<smem>>
      %c1_244 = arith.constant 1 : index
      %c3_245 = arith.constant 3 : index
      %c1_246 = arith.constant 1 : index
      %454 = vector.load %arg7[%c1_244, %c3_245, %c1_246] : memref<2x22x22xf32, #tpu.memory_space<vmem>>, vector<1x16x16xf32>
      %455 = vector.shape_cast %454 : vector<1x16x16xf32> to vector<16x16xf32>
      %456 = vector.broadcast %453 : f32 to vector<16x16xf32>
      %457 = arith.mulf %456, %455 : vector<16x16xf32>
      %458 = arith.addf %452, %457 : vector<16x16xf32>
      %c72 = arith.constant 72 : index
      %459 = memref.load %arg2[%c72] : memref<98xf32, #tpu.memory_space<smem>>
      %c1_247 = arith.constant 1 : index
      %c3_248 = arith.constant 3 : index
      %c2_249 = arith.constant 2 : index
      %460 = vector.load %arg7[%c1_247, %c3_248, %c2_249] : memref<2x22x22xf32, #tpu.memory_space<vmem>>, vector<1x16x16xf32>
      %461 = vector.shape_cast %460 : vector<1x16x16xf32> to vector<16x16xf32>
      %462 = vector.broadcast %459 : f32 to vector<16x16xf32>
      %463 = arith.mulf %462, %461 : vector<16x16xf32>
      %464 = arith.addf %458, %463 : vector<16x16xf32>
      %c73 = arith.constant 73 : index
      %465 = memref.load %arg2[%c73] : memref<98xf32, #tpu.memory_space<smem>>
      %c1_250 = arith.constant 1 : index
      %c3_251 = arith.constant 3 : index
      %c3_252 = arith.constant 3 : index
      %466 = vector.load %arg7[%c1_250, %c3_251, %c3_252] : memref<2x22x22xf32, #tpu.memory_space<vmem>>, vector<1x16x16xf32>
      %467 = vector.shape_cast %466 : vector<1x16x16xf32> to vector<16x16xf32>
      %468 = vector.broadcast %465 : f32 to vector<16x16xf32>
      %469 = arith.mulf %468, %467 : vector<16x16xf32>
      %470 = arith.addf %464, %469 : vector<16x16xf32>
      %c74 = arith.constant 74 : index
      %471 = memref.load %arg2[%c74] : memref<98xf32, #tpu.memory_space<smem>>
      %c1_253 = arith.constant 1 : index
      %c3_254 = arith.constant 3 : index
      %c4_255 = arith.constant 4 : index
      %472 = vector.load %arg7[%c1_253, %c3_254, %c4_255] : memref<2x22x22xf32, #tpu.memory_space<vmem>>, vector<1x16x16xf32>
      %473 = vector.shape_cast %472 : vector<1x16x16xf32> to vector<16x16xf32>
      %474 = vector.broadcast %471 : f32 to vector<16x16xf32>
      %475 = arith.mulf %474, %473 : vector<16x16xf32>
      %476 = arith.addf %470, %475 : vector<16x16xf32>
      %c75 = arith.constant 75 : index
      %477 = memref.load %arg2[%c75] : memref<98xf32, #tpu.memory_space<smem>>
      %c1_256 = arith.constant 1 : index
      %c3_257 = arith.constant 3 : index
      %c5_258 = arith.constant 5 : index
      %478 = vector.load %arg7[%c1_256, %c3_257, %c5_258] : memref<2x22x22xf32, #tpu.memory_space<vmem>>, vector<1x16x16xf32>
      %479 = vector.shape_cast %478 : vector<1x16x16xf32> to vector<16x16xf32>
      %480 = vector.broadcast %477 : f32 to vector<16x16xf32>
      %481 = arith.mulf %480, %479 : vector<16x16xf32>
      %482 = arith.addf %476, %481 : vector<16x16xf32>
      %c76 = arith.constant 76 : index
      %483 = memref.load %arg2[%c76] : memref<98xf32, #tpu.memory_space<smem>>
      %c1_259 = arith.constant 1 : index
      %c3_260 = arith.constant 3 : index
      %c6_261 = arith.constant 6 : index
      %484 = vector.load %arg7[%c1_259, %c3_260, %c6_261] : memref<2x22x22xf32, #tpu.memory_space<vmem>>, vector<1x16x16xf32>
      %485 = vector.shape_cast %484 : vector<1x16x16xf32> to vector<16x16xf32>
      %486 = vector.broadcast %483 : f32 to vector<16x16xf32>
      %487 = arith.mulf %486, %485 : vector<16x16xf32>
      %488 = arith.addf %482, %487 : vector<16x16xf32>
      %c77 = arith.constant 77 : index
      %489 = memref.load %arg2[%c77] : memref<98xf32, #tpu.memory_space<smem>>
      %c1_262 = arith.constant 1 : index
      %c4_263 = arith.constant 4 : index
      %c0_264 = arith.constant 0 : index
      %490 = vector.load %arg7[%c1_262, %c4_263, %c0_264] : memref<2x22x22xf32, #tpu.memory_space<vmem>>, vector<1x16x16xf32>
      %491 = vector.shape_cast %490 : vector<1x16x16xf32> to vector<16x16xf32>
      %492 = vector.broadcast %489 : f32 to vector<16x16xf32>
      %493 = arith.mulf %492, %491 : vector<16x16xf32>
      %494 = arith.addf %488, %493 : vector<16x16xf32>
      %c78 = arith.constant 78 : index
      %495 = memref.load %arg2[%c78] : memref<98xf32, #tpu.memory_space<smem>>
      %c1_265 = arith.constant 1 : index
      %c4_266 = arith.constant 4 : index
      %c1_267 = arith.constant 1 : index
      %496 = vector.load %arg7[%c1_265, %c4_266, %c1_267] : memref<2x22x22xf32, #tpu.memory_space<vmem>>, vector<1x16x16xf32>
      %497 = vector.shape_cast %496 : vector<1x16x16xf32> to vector<16x16xf32>
      %498 = vector.broadcast %495 : f32 to vector<16x16xf32>
      %499 = arith.mulf %498, %497 : vector<16x16xf32>
      %500 = arith.addf %494, %499 : vector<16x16xf32>
      %c79 = arith.constant 79 : index
      %501 = memref.load %arg2[%c79] : memref<98xf32, #tpu.memory_space<smem>>
      %c1_268 = arith.constant 1 : index
      %c4_269 = arith.constant 4 : index
      %c2_270 = arith.constant 2 : index
      %502 = vector.load %arg7[%c1_268, %c4_269, %c2_270] : memref<2x22x22xf32, #tpu.memory_space<vmem>>, vector<1x16x16xf32>
      %503 = vector.shape_cast %502 : vector<1x16x16xf32> to vector<16x16xf32>
      %504 = vector.broadcast %501 : f32 to vector<16x16xf32>
      %505 = arith.mulf %504, %503 : vector<16x16xf32>
      %506 = arith.addf %500, %505 : vector<16x16xf32>
      %c80 = arith.constant 80 : index
      %507 = memref.load %arg2[%c80] : memref<98xf32, #tpu.memory_space<smem>>
      %c1_271 = arith.constant 1 : index
      %c4_272 = arith.constant 4 : index
      %c3_273 = arith.constant 3 : index
      %508 = vector.load %arg7[%c1_271, %c4_272, %c3_273] : memref<2x22x22xf32, #tpu.memory_space<vmem>>, vector<1x16x16xf32>
      %509 = vector.shape_cast %508 : vector<1x16x16xf32> to vector<16x16xf32>
      %510 = vector.broadcast %507 : f32 to vector<16x16xf32>
      %511 = arith.mulf %510, %509 : vector<16x16xf32>
      %512 = arith.addf %506, %511 : vector<16x16xf32>
      %c81 = arith.constant 81 : index
      %513 = memref.load %arg2[%c81] : memref<98xf32, #tpu.memory_space<smem>>
      %c1_274 = arith.constant 1 : index
      %c4_275 = arith.constant 4 : index
      %c4_276 = arith.constant 4 : index
      %514 = vector.load %arg7[%c1_274, %c4_275, %c4_276] : memref<2x22x22xf32, #tpu.memory_space<vmem>>, vector<1x16x16xf32>
      %515 = vector.shape_cast %514 : vector<1x16x16xf32> to vector<16x16xf32>
      %516 = vector.broadcast %513 : f32 to vector<16x16xf32>
      %517 = arith.mulf %516, %515 : vector<16x16xf32>
      %518 = arith.addf %512, %517 : vector<16x16xf32>
      %c82 = arith.constant 82 : index
      %519 = memref.load %arg2[%c82] : memref<98xf32, #tpu.memory_space<smem>>
      %c1_277 = arith.constant 1 : index
      %c4_278 = arith.constant 4 : index
      %c5_279 = arith.constant 5 : index
      %520 = vector.load %arg7[%c1_277, %c4_278, %c5_279] : memref<2x22x22xf32, #tpu.memory_space<vmem>>, vector<1x16x16xf32>
      %521 = vector.shape_cast %520 : vector<1x16x16xf32> to vector<16x16xf32>
      %522 = vector.broadcast %519 : f32 to vector<16x16xf32>
      %523 = arith.mulf %522, %521 : vector<16x16xf32>
      %524 = arith.addf %518, %523 : vector<16x16xf32>
      %c83 = arith.constant 83 : index
      %525 = memref.load %arg2[%c83] : memref<98xf32, #tpu.memory_space<smem>>
      %c1_280 = arith.constant 1 : index
      %c4_281 = arith.constant 4 : index
      %c6_282 = arith.constant 6 : index
      %526 = vector.load %arg7[%c1_280, %c4_281, %c6_282] : memref<2x22x22xf32, #tpu.memory_space<vmem>>, vector<1x16x16xf32>
      %527 = vector.shape_cast %526 : vector<1x16x16xf32> to vector<16x16xf32>
      %528 = vector.broadcast %525 : f32 to vector<16x16xf32>
      %529 = arith.mulf %528, %527 : vector<16x16xf32>
      %530 = arith.addf %524, %529 : vector<16x16xf32>
      %c84 = arith.constant 84 : index
      %531 = memref.load %arg2[%c84] : memref<98xf32, #tpu.memory_space<smem>>
      %c1_283 = arith.constant 1 : index
      %c5_284 = arith.constant 5 : index
      %c0_285 = arith.constant 0 : index
      %532 = vector.load %arg7[%c1_283, %c5_284, %c0_285] : memref<2x22x22xf32, #tpu.memory_space<vmem>>, vector<1x16x16xf32>
      %533 = vector.shape_cast %532 : vector<1x16x16xf32> to vector<16x16xf32>
      %534 = vector.broadcast %531 : f32 to vector<16x16xf32>
      %535 = arith.mulf %534, %533 : vector<16x16xf32>
      %536 = arith.addf %530, %535 : vector<16x16xf32>
      %c85 = arith.constant 85 : index
      %537 = memref.load %arg2[%c85] : memref<98xf32, #tpu.memory_space<smem>>
      %c1_286 = arith.constant 1 : index
      %c5_287 = arith.constant 5 : index
      %c1_288 = arith.constant 1 : index
      %538 = vector.load %arg7[%c1_286, %c5_287, %c1_288] : memref<2x22x22xf32, #tpu.memory_space<vmem>>, vector<1x16x16xf32>
      %539 = vector.shape_cast %538 : vector<1x16x16xf32> to vector<16x16xf32>
      %540 = vector.broadcast %537 : f32 to vector<16x16xf32>
      %541 = arith.mulf %540, %539 : vector<16x16xf32>
      %542 = arith.addf %536, %541 : vector<16x16xf32>
      %c86 = arith.constant 86 : index
      %543 = memref.load %arg2[%c86] : memref<98xf32, #tpu.memory_space<smem>>
      %c1_289 = arith.constant 1 : index
      %c5_290 = arith.constant 5 : index
      %c2_291 = arith.constant 2 : index
      %544 = vector.load %arg7[%c1_289, %c5_290, %c2_291] : memref<2x22x22xf32, #tpu.memory_space<vmem>>, vector<1x16x16xf32>
      %545 = vector.shape_cast %544 : vector<1x16x16xf32> to vector<16x16xf32>
      %546 = vector.broadcast %543 : f32 to vector<16x16xf32>
      %547 = arith.mulf %546, %545 : vector<16x16xf32>
      %548 = arith.addf %542, %547 : vector<16x16xf32>
      %c87 = arith.constant 87 : index
      %549 = memref.load %arg2[%c87] : memref<98xf32, #tpu.memory_space<smem>>
      %c1_292 = arith.constant 1 : index
      %c5_293 = arith.constant 5 : index
      %c3_294 = arith.constant 3 : index
      %550 = vector.load %arg7[%c1_292, %c5_293, %c3_294] : memref<2x22x22xf32, #tpu.memory_space<vmem>>, vector<1x16x16xf32>
      %551 = vector.shape_cast %550 : vector<1x16x16xf32> to vector<16x16xf32>
      %552 = vector.broadcast %549 : f32 to vector<16x16xf32>
      %553 = arith.mulf %552, %551 : vector<16x16xf32>
      %554 = arith.addf %548, %553 : vector<16x16xf32>
      %c88 = arith.constant 88 : index
      %555 = memref.load %arg2[%c88] : memref<98xf32, #tpu.memory_space<smem>>
      %c1_295 = arith.constant 1 : index
      %c5_296 = arith.constant 5 : index
      %c4_297 = arith.constant 4 : index
      %556 = vector.load %arg7[%c1_295, %c5_296, %c4_297] : memref<2x22x22xf32, #tpu.memory_space<vmem>>, vector<1x16x16xf32>
      %557 = vector.shape_cast %556 : vector<1x16x16xf32> to vector<16x16xf32>
      %558 = vector.broadcast %555 : f32 to vector<16x16xf32>
      %559 = arith.mulf %558, %557 : vector<16x16xf32>
      %560 = arith.addf %554, %559 : vector<16x16xf32>
      %c89 = arith.constant 89 : index
      %561 = memref.load %arg2[%c89] : memref<98xf32, #tpu.memory_space<smem>>
      %c1_298 = arith.constant 1 : index
      %c5_299 = arith.constant 5 : index
      %c5_300 = arith.constant 5 : index
      %562 = vector.load %arg7[%c1_298, %c5_299, %c5_300] : memref<2x22x22xf32, #tpu.memory_space<vmem>>, vector<1x16x16xf32>
      %563 = vector.shape_cast %562 : vector<1x16x16xf32> to vector<16x16xf32>
      %564 = vector.broadcast %561 : f32 to vector<16x16xf32>
      %565 = arith.mulf %564, %563 : vector<16x16xf32>
      %566 = arith.addf %560, %565 : vector<16x16xf32>
      %c90 = arith.constant 90 : index
      %567 = memref.load %arg2[%c90] : memref<98xf32, #tpu.memory_space<smem>>
      %c1_301 = arith.constant 1 : index
      %c5_302 = arith.constant 5 : index
      %c6_303 = arith.constant 6 : index
      %568 = vector.load %arg7[%c1_301, %c5_302, %c6_303] : memref<2x22x22xf32, #tpu.memory_space<vmem>>, vector<1x16x16xf32>
      %569 = vector.shape_cast %568 : vector<1x16x16xf32> to vector<16x16xf32>
      %570 = vector.broadcast %567 : f32 to vector<16x16xf32>
      %571 = arith.mulf %570, %569 : vector<16x16xf32>
      %572 = arith.addf %566, %571 : vector<16x16xf32>
      %c91 = arith.constant 91 : index
      %573 = memref.load %arg2[%c91] : memref<98xf32, #tpu.memory_space<smem>>
      %c1_304 = arith.constant 1 : index
      %c6_305 = arith.constant 6 : index
      %c0_306 = arith.constant 0 : index
      %574 = vector.load %arg7[%c1_304, %c6_305, %c0_306] : memref<2x22x22xf32, #tpu.memory_space<vmem>>, vector<1x16x16xf32>
      %575 = vector.shape_cast %574 : vector<1x16x16xf32> to vector<16x16xf32>
      %576 = vector.broadcast %573 : f32 to vector<16x16xf32>
      %577 = arith.mulf %576, %575 : vector<16x16xf32>
      %578 = arith.addf %572, %577 : vector<16x16xf32>
      %c92 = arith.constant 92 : index
      %579 = memref.load %arg2[%c92] : memref<98xf32, #tpu.memory_space<smem>>
      %c1_307 = arith.constant 1 : index
      %c6_308 = arith.constant 6 : index
      %c1_309 = arith.constant 1 : index
      %580 = vector.load %arg7[%c1_307, %c6_308, %c1_309] : memref<2x22x22xf32, #tpu.memory_space<vmem>>, vector<1x16x16xf32>
      %581 = vector.shape_cast %580 : vector<1x16x16xf32> to vector<16x16xf32>
      %582 = vector.broadcast %579 : f32 to vector<16x16xf32>
      %583 = arith.mulf %582, %581 : vector<16x16xf32>
      %584 = arith.addf %578, %583 : vector<16x16xf32>
      %c93 = arith.constant 93 : index
      %585 = memref.load %arg2[%c93] : memref<98xf32, #tpu.memory_space<smem>>
      %c1_310 = arith.constant 1 : index
      %c6_311 = arith.constant 6 : index
      %c2_312 = arith.constant 2 : index
      %586 = vector.load %arg7[%c1_310, %c6_311, %c2_312] : memref<2x22x22xf32, #tpu.memory_space<vmem>>, vector<1x16x16xf32>
      %587 = vector.shape_cast %586 : vector<1x16x16xf32> to vector<16x16xf32>
      %588 = vector.broadcast %585 : f32 to vector<16x16xf32>
      %589 = arith.mulf %588, %587 : vector<16x16xf32>
      %590 = arith.addf %584, %589 : vector<16x16xf32>
      %c94 = arith.constant 94 : index
      %591 = memref.load %arg2[%c94] : memref<98xf32, #tpu.memory_space<smem>>
      %c1_313 = arith.constant 1 : index
      %c6_314 = arith.constant 6 : index
      %c3_315 = arith.constant 3 : index
      %592 = vector.load %arg7[%c1_313, %c6_314, %c3_315] : memref<2x22x22xf32, #tpu.memory_space<vmem>>, vector<1x16x16xf32>
      %593 = vector.shape_cast %592 : vector<1x16x16xf32> to vector<16x16xf32>
      %594 = vector.broadcast %591 : f32 to vector<16x16xf32>
      %595 = arith.mulf %594, %593 : vector<16x16xf32>
      %596 = arith.addf %590, %595 : vector<16x16xf32>
      %c95 = arith.constant 95 : index
      %597 = memref.load %arg2[%c95] : memref<98xf32, #tpu.memory_space<smem>>
      %c1_316 = arith.constant 1 : index
      %c6_317 = arith.constant 6 : index
      %c4_318 = arith.constant 4 : index
      %598 = vector.load %arg7[%c1_316, %c6_317, %c4_318] : memref<2x22x22xf32, #tpu.memory_space<vmem>>, vector<1x16x16xf32>
      %599 = vector.shape_cast %598 : vector<1x16x16xf32> to vector<16x16xf32>
      %600 = vector.broadcast %597 : f32 to vector<16x16xf32>
      %601 = arith.mulf %600, %599 : vector<16x16xf32>
      %602 = arith.addf %596, %601 : vector<16x16xf32>
      %c96 = arith.constant 96 : index
      %603 = memref.load %arg2[%c96] : memref<98xf32, #tpu.memory_space<smem>>
      %c1_319 = arith.constant 1 : index
      %c6_320 = arith.constant 6 : index
      %c5_321 = arith.constant 5 : index
      %604 = vector.load %arg7[%c1_319, %c6_320, %c5_321] : memref<2x22x22xf32, #tpu.memory_space<vmem>>, vector<1x16x16xf32>
      %605 = vector.shape_cast %604 : vector<1x16x16xf32> to vector<16x16xf32>
      %606 = vector.broadcast %603 : f32 to vector<16x16xf32>
      %607 = arith.mulf %606, %605 : vector<16x16xf32>
      %608 = arith.addf %602, %607 : vector<16x16xf32>
      %c97 = arith.constant 97 : index
      %609 = memref.load %arg2[%c97] : memref<98xf32, #tpu.memory_space<smem>>
      %c1_322 = arith.constant 1 : index
      %c6_323 = arith.constant 6 : index
      %c6_324 = arith.constant 6 : index
      %610 = vector.load %arg7[%c1_322, %c6_323, %c6_324] : memref<2x22x22xf32, #tpu.memory_space<vmem>>, vector<1x16x16xf32>
      %611 = vector.shape_cast %610 : vector<1x16x16xf32> to vector<16x16xf32>
      %612 = vector.broadcast %609 : f32 to vector<16x16xf32>
      %613 = arith.mulf %612, %611 : vector<16x16xf32>
      %614 = arith.addf %608, %613 : vector<16x16xf32>
      %615 = arith.negf %614 : vector<16x16xf32>
      %616 = math.exp %615 : vector<16x16xf32>
      %cst_325 = arith.constant 1.000000e+00 : f32
      %617 = vector.broadcast %cst_325 : f32 to vector<16x16xf32>
      %618 = arith.addf %617, %616 : vector<16x16xf32>
      %619 = arith.divf %617, %618 : vector<16x16xf32>
      %c0_326 = arith.constant 0 : index
      %c0_327 = arith.constant 0 : index
      %c0_328 = arith.constant 0 : index
      %c0_329 = arith.constant 0 : index
      %620 = vector.load %arg4[%c0_326, %c0_327, %c0_328, %c0_329] : memref<1x1x16x16xf32, #tpu.memory_space<vmem>>, vector<1x1x16x16xf32>
      %621 = vector.shape_cast %620 : vector<1x1x16x16xf32> to vector<16x16xf32>
      %622 = vector.shape_cast %619 : vector<16x16xf32> to vector<1x1x16x16xf32>
      tpu.vector_store %arg4[%c0_326, %c0_327, %c0_328, %c0_329], %622 {strides = array<i32>} : memref<1x1x16x16xf32, #tpu.memory_space<vmem>>, vector<1x1x16x16xf32>,
    } else {
    }
    return
  }
  func.func @transform_0(%arg0: i32, %arg1: i32) -> i32 {
    %c0_i32 = arith.constant 0 : i32
    %c0_i32_0 = arith.constant 0 : i32
    return %c0_i32 : i32
  }
  func.func @transform_1(%arg0: i32, %arg1: i32) -> (i32, i32, i32, i32) {
    %c0_i32 = arith.constant 0 : i32
    %c0_i32_0 = arith.constant 0 : i32
    %c0_i32_1 = arith.constant 0 : i32
    return %arg0, %arg1, %c0_i32, %c0_i32_0 : i32, i32, i32, i32
  }
  func.func @transform_2(%arg0: i32, %arg1: i32) -> (i32, i32, i32, i32) {
    %c0_i32 = arith.constant 0 : i32
    %c0_i32_0 = arith.constant 0 : i32
    %c0_i32_1 = arith.constant 0 : i32
    %c0_i32_2 = arith.constant 0 : i32
    return %arg0, %c0_i32, %c0_i32_0, %c0_i32_1 : i32, i32, i32, i32
  }
}

</mosaic_0001>

<bundles_post_ra>
// kernel: spatial_attention.1
= control target key start
LH: loop header
LB: loop body
LE: loop exit
PB: predicated region body
PF: predicated region fallthrough
CT: control target
= control target key end

     0   :  { %7 = vsyncpa [#allocation8], 0  ;;  %s2895_s0 = inlined_call_operand.vmem [shape: f32[98], index: 0, kind: input, shape index: {}]   ;;  %s2896_s1 = inlined_call_operand.hbm [shape: f32[2,4,16,16], index: 1, kind: input, shape index: {}]   ;;  %s2897_s2 = inlined_call_operand.hbm [shape: f32[2,1,16,16], index: 2, kind: output, shape index: {}]  }
   0x1   :  { %8 = vsyncpa [#allocation6], 0 }
   0x2   :  { %10 = vsyncpa [#allocation6 + $0x1], 0 }
   0x3   :  { %11 = vsyncpa [#allocation7], 0 }
   0x4   :  { %13 = vsyncpa [#allocation7 + $0x1], 0  ;;  %s2073_s9 = smov 0   ;;  %s2075_s10 = smov 0  }
   0x5   :  { %s2077_s11 = smov 0   ;;  %s2079_s12 = smov 0  }
   0x6   :  { %s2081_s13 = smov 0   ;;  %s2083_s14 = smov 0  }
   0x7 LB: > { %s1701_s15 = sadd.s32 4294967295, %s2040_s14   ;;  %s1702_s16 = sadd.s32 4294967294, %s2040_s14   ;;  %s2040_s14 = sphi %s2083_s14, %s19_s14   ;;  %s2036_s13 = sphi %s2081_s13, %s2915_s13   ;;  %s2032_s12 = sphi %s2079_s12, %s2914_s12   ;;  %s2028_s11 = sphi %s2077_s11, %s2913_s11   ;;  %s2024_s10 = sphi %s2075_s10, %s2912_s10   ;;  %s2020_s9 = sphi %s2073_s9, %s2911_s9  }
   0x8   : > { %s61_s17 = sadd.s32 1, %s2028_s11  ;;  %p68_p0 = scmp.ne.s32.totalorder %s2028_s11, %s2024_s10 }
   0x9   : > { %p69_p1 = scmp.eq.s32.totalorder %s2040_s14, 0  ;;  %p74_p2 = scmp.ne.s32.totalorder %s2024_s10, %s2020_s9 }
   0xa   : > { %p2111_p3 = scmp.eq.s32.totalorder %s1701_s15, 0  ;;  %p98_p4 = scmp.eq.s32.totalorder %s1701_s15, 1 }
   0xb   : > { %p2115_p5 = por %p69_p1, %p68_p0  ;;  %p104_p6 = scmp.eq.s32.totalorder %s1702_s16, 1 }
   0xc   : > { %p2121_p7 = por %p2111_p3, %p74_p2  ;;  %p2125_p8 = por %p98_p4, %p68_p0 }
   0xd   : > { %p2129_p9 = por %p104_p6, %p74_p2  ;;  %p1703_p10 = scmp.ge.s32.totalorder %s2040_s14, 1 }
   0xe   : > { %s2902_s21 = scalar_select %p2125_p8, 1, 0 }
   0xf   : > { %s2903_s22 = scalar_select %p2129_p9, 1, 0 }
  0x10   : > { %p111_p11 = scmp.lt.s32.totalorder %s2040_s14, 3  ;;  %s124_s25 = sshll.u32 %s2895_s0, 4  ;;  %s125_s25 = int_to_ptr.vmem [resolvable:$true] %s124_s25 }
  0x11   : > { %p1840_p0 = scmp.lt.s32.totalorder %s2040_s14, 2  ;;  %s31_s29 = sadd.s32 1, %s2036_s13 }
  0x12   : > { %p2138_p12 = pnand %p1703_p10, %p111_p11  ;;  %p2159_p6 = scmp.ge.s32.totalorder %s31_s29, 2 }
  0x13   : > { %p2148_p2 = pnand %p1840_p0, %p2115_p5  ;;  %s135_s3 = sand.u32 1, %s2028_s11  }
  0x14   : > { %p1827_p1 = pneg %p2138_p12  ;;  %s1913_s4 = scalar_lea.vmem %s125_s25, 16 }
  0x15   : > { %p1914_p10 = scmp.ne.s32.totalorder %s125_s25, %s1913_s4  ;;  %p1921_p13 = scmp.lt.s32.totalorder %s125_s25, %s125_s25 }
  0x16   : > { %p2154_p4 = pnand %p1827_p1, %p2111_p3  ;;  %p1922_p9 = scmp.lt.s32.totalorder %s1913_s4, %s1913_s4 }
  0x18   : > { %p1915_p11 = pneg %p2154_p4  ;;  %p1923_p8 = por %p1922_p9, %p1921_p13 }
  0x1a   : > { %p1916_p5 = pnand %p1915_p11, %p1914_p10 }
  0x1c   : > { %p1917_p0 = pneg %p1916_p5 }
  0x1e   : > { %p1924_p1 = pnand %p1923_p8, %p1917_p0 }
  0x20   : > { %1927 = shalt.err (!%p1924_p1)
}
  0x21   : > { %s2042_s5 = smov [#allocation5]   ;;  %s2917_s29 = smov (%p2159_p6, %s31_s29), 0 }
  0x22   : > { %1830 = dma.vmem_to_smem (!%p2154_p4), %s125_s25, 16, %s2042_s5, [#allocation8]  }
  0x23   : > { %s1706_s6 = sshll.u32 %s135_s3, 6  ;;  %s56_s7 = ssub.s32 %s2036_s13, %s2917_s29 }
  0x24   : > { %p59_p10 = scmp.eq.s32.totalorder %s56_s7, 0  ;;  %s1817_s8 = sshll.u32 %s2036_s13, 10 }
  0x25   : > { %s148_s19 = scalar_lea.hbm %s2896_s1, %s1817_s8  ;;  %s139_s23 = scalar_lea.vmem [#allocation9], %s1706_s6 }
  0x26   : > { %s149_s24 = sshll.u32 %s139_s23, 4  ;;  %s136_s4 = scalar_lea.sflag [#allocation6], %s135_s3  ;;  %s150_s24 = int_to_ptr.vmem [resolvable:$true] %s149_s24 }
  0x27   : > { %s2181_s28 = scalar_select %p59_p10, %s2028_s11, %s61_s17  }
  0x28   : > { %p1930_p8 = pneg %p2148_p2  ;;  %s1941_s25 = scalar_lea.vmem %s150_s24, 1024 }
  0x29   : > { %p1942_p9 = scmp.ne.s32.totalorder %s150_s24, %s1941_s25  ;;  %s2043_s30 = smov [#allocation9]  }
  0x2a   : > { %s1946_s5 = sshll.u32 %s2043_s30, 4  ;;  %s1947_s5 = int_to_ptr.vmem [resolvable:$false] %s1946_s5 }
  0x2b   : > { %p1944_p13 = pnand %p1942_p9, %p1930_p8  ;;  %s1948_s7 = scalar_lea.vmem %s1947_s5, 2048 }
  0x2c   : > { %p1949_p6 = scmp.lt.s32.totalorder %s150_s24, %s1947_s5  ;;  %p1950_p11 = scmp.lt.s32.totalorder %s1948_s7, %s1941_s25 }
  0x2d   : > { %p1945_p4 = pneg %p1944_p13 }
  0x2e   : > { %p1951_p5 = por %p1950_p11, %p1949_p6 }
  0x30   : > { %p1952_p0 = pnand %p1951_p5, %p1945_p4 }
  0x32   : > { %1955 = shalt.err (!%p1952_p0)
}
  0x33   : > { %s2044_s6 = smov 128   ;;  %s2045_s17 = smov 8  }
  0x34   : > { %1834 = dma.hbm_to_vmem [thread:$0]  (!%p2148_p2), %s148_s19, 1024, %s150_s24, %s136_s4, %s2044_s6, %s2044_s6, %s2045_s17  }
  0x35   : > { %161 = sbr.rel (%p2138_p12) target bundleno = 708 (0x2c4), region = 28 }
  0x3a   : > { %2007 = dma.done.wait (%p2111_p3), [#allocation8], 16  }
  0x3b   : > { %2009 = vsyncadd (%p2111_p3), [#allocation8], 4294967280  ;;  %s2194_s3 = sand.u32 1, %s2024_s10  }
  0x3c   : > { %s1711_s8 = sshll.u32 %s2194_s3, 6  ;;  %s168_s15 = scalar_lea.sflag [#allocation6], %s2194_s3 }
  0x3d   : > { %s171_s16 = scalar_lea.vmem [#allocation9], %s1711_s8 }
  0x3e   : > { %2011 = dma.done.wait (%p2121_p7), %s168_s15, 1024  }
  0x3f   : > { %2013 = vsyncadd (%p2121_p7), %s168_s15, 4294966272 }
  0x40   : > { %176 = sfence }
  0x41   : > { %vm198_vm0 = vcmask 130048   ;;  %v203_v0 = vld [vmem:[%s171_s16] sm:$0xff]  ;;  %v205_v1 = vld [vmem:[%s171_s16 + $0x10] sm:$0xff]  ;;  %v2046_v3 = vmov 0.0   ;;  %v204_v8 = vld [vmem:[%s171_s16 + $0x8] sm:$0xff]  ;;  %vm255_vm1 = vcmask 179200  }
  0x42   : > { %v207_v2 = vld [vmem:[%s171_s16 + $0x20] sm:$0xff]  ;;  %199 = vst.msk [vmem:[#allocation2] sm:$0xff] %vm198_vm0, %v2046_v3  ;;  %v209_v4 = vld [vmem:[%s171_s16 + $0x30] sm:$0xff]  ;;  %v214_v5 = vsel %vm198_vm0, %v203_v0, 0.0  ;;  %v215_v6 = vsel %vm198_vm0, %v205_v1, 0.0  ;;  %200 = vst.msk [vmem:[#allocation2 + $0x8] sm:$0xff] %vm198_vm0, %v2046_v3 }
  0x43   : > { %v217_v7 = vsel %vm198_vm0, %v207_v2, 0.0  ;;  %v206_v9 = vld [vmem:[%s171_s16 + $0x18] sm:$0xff]  ;;  %v216_v10 = vadd.f32 %v215_v6, %v214_v5  ;;  %v208_v11 = vld [vmem:[%s171_s16 + $0x28] sm:$0xff]  ;;  %v221_v13 = vsel %vm198_vm0, %v204_v8, 0.0  ;;  %v219_v15 = vsel %vm198_vm0, %v209_v4, 0.0  ;;  %256 = vst.msk [vmem:[#allocation4] sm:$0xff] %vm255_vm1, %v2046_v3 }
  0x44   : > { %v210_v12 = vld [vmem:[%s171_s16 + $0x38] sm:$0xff]  ;;  %v222_v14 = vsel %vm198_vm0, %v206_v9, 0.0  ;;  %v224_v17 = vsel %vm198_vm0, %v208_v11, 0.0  ;;  %257 = vst.msk [vmem:[#allocation4 + $0x8] sm:$0xff] %vm255_vm1, %v2046_v3  ;;  %260 = vst.msk [vmem:[#allocation4 + $0x18] sm:$0xff] %vm255_vm1, %v2046_v3  ;;  %v234_v20 = vsel %vm198_vm0, %v203_v0, -inf }
  0x45   : > { %v223_v16 = vadd.f32 %v222_v14, %v221_v13  ;;  %v218_v18 = vadd.f32 %v217_v7, %v216_v10  ;;  %v226_v19 = vsel %vm198_vm0, %v210_v12, 0.0  ;;  %261 = vst.msk [vmem:[#allocation4 + $0x20] sm:$0xff] %vm255_vm1, %v2046_v3  ;;  %v2047_v22 = vmov -inf   ;;  %s2048_s18 = smov 3   ;;  %s1713_s20 = sld [smem:[#allocation5 + $0x1]] }
  0x46   : > { %201 = vst.msk [vmem:[#allocation3] sm:$0xff] %vm198_vm0, %v2047_v22  ;;  %v235_v23 = vsel %vm198_vm0, %v205_v1, -inf  ;;  %v236_v24 = vsel %vm198_vm0, %v207_v2, -inf  ;;  %v238_v25 = vsel %vm198_vm0, %v209_v4, -inf  ;;  %202 = vst.msk [vmem:[#allocation3 + $0x8] sm:$0xff] %vm198_vm0, %v2047_v22  ;;  %v241_v29 = vsel %vm198_vm0, %v204_v8, -inf }
  0x47   : > { %v225_v21 = vadd.f32 %v224_v17, %v223_v16  ;;  %v220_v26 = vadd.f32 %v219_v15, %v218_v18  ;;  %v237_v27 = vmax.f32 %v234_v20, %v236_v24  ;;  %v239_v28 = vmax.f32 %v235_v23, %v238_v25  ;;  %s1714_s26 = sld [smem:[#allocation5 + $0x2]]  ;;  %s2049_s23 = smov 127  }
  0x48   : > { %v242_v31 = vsel %vm198_vm0, %v206_v9, -inf  ;;  %v243_v32 = vsel %vm198_vm0, %v208_v11, -inf  ;;  %v245_v33 = vsel %vm198_vm0, %v210_v12, -inf  ;;  %vm258_vm2 = vcmask 177152   ;;  %s1715_s27 = sld [smem:[#allocation5 + $0x3]]  ;;  %s2050_s4 = smov 126  }
  0x49   : > { %v227_v30 = vadd.f32 %v226_v19, %v225_v21  ;;  %v211_v34 = vld [vmem:[#allocation2] sm:$0xff]  ;;  %v212_v35 = vld [vmem:[#allocation2 + $0x8] sm:$0xff]  ;;  %v244_v36 = vmax.f32 %v241_v29, %v243_v32  ;;  %v246_v37 = vmax.f32 %v242_v31, %v245_v33  ;;  %v240_v40 = vmax.f32 %v237_v27, %v239_v28  ;;  %259 = vst.msk [vmem:[#allocation4 + $0x10] sm:$0x3f] %vm258_vm2, %v2046_v3  ;;  %s1716_s19 = sld [smem:[#allocation5 + $0x4]]  ;;  %s2051_s30 = smov 125  }
  0x4a   : > { %v228_v38 = vadd.f32 %v220_v26, %v211_v34  ;;  %262 = vst.msk [vmem:[#allocation4 + $0x28] sm:$0x3f] %vm258_vm2, %v2046_v3  ;;  %vm273_vm3 = vcmask 154648   ;;  %s1717_s24 = sld [smem:[#allocation5 + $0x5]]  ;;  %s2052_s7 = smov 124  }
  0x4b   : > { %v229_v39 = vadd.f32 %v227_v30, %v212_v35  ;;  %v247_v41 = vmax.f32 %v244_v36, %v246_v37  ;;  %v298_v53 = vstv %s1713_s20  ;;  %s1718_s25 = sld [smem:[#allocation5 + $0x6]]  ;;  %s2053_s17 = smov 123  }
  0x4c   : > { %230 = vst.msk [vmem:[#allocation2] sm:$0xff] %vm198_vm0, %v228_v38  ;;  %s1720_s5 = sld [smem:[#allocation5 + $0x8]]  ;;  %s2054_s15 = smov 122  }
  0x4d   : > { %231 = vst.msk [vmem:[#allocation2 + $0x8] sm:$0xff] %vm198_vm0, %v229_v39  ;;  %v232_v42 = vld [vmem:[#allocation3] sm:$0xff]  ;;  %v233_v43 = vld [vmem:[#allocation3 + $0x8] sm:$0xff]  ;;  %v312_v57 = vstv %s1714_s26  ;;  %s1721_s6 = sld [smem:[#allocation5 + $0x9]]  ;;  %p2908_p7 = scmp.ne.s32.totalorder %s2902_s21, 0 }
  0x4e   : > { %v248_v44 = vmax.f32 %v232_v42, %v240_v40  ;;  %v249_v45 = vmax.f32 %v233_v43, %v247_v41  ;;  %v326_v61 = vstv %s1715_s27  ;;  %s1722_s8 = sld [smem:[#allocation5 + $0xa]] }
  0x4f   : > { %v340_v0 = vstv %s1716_s19  ;;  %s1723_s16 = sld [smem:[#allocation5 + $0xb]] }
  0x50   : > { %250 = vst.msk [vmem:[#allocation3] sm:$0xff] %vm198_vm0, %v248_v44  ;;  %251 = vst.msk [vmem:[#allocation3 + $0x8] sm:$0xff] %vm198_vm0, %v249_v45  ;;  %v354_v3 = vstv %s1717_s24  ;;  %s1725_s20 = sld [smem:[#allocation5 + $0xd]] }
  0x51   : > { %v368_v6 = vstv %s1718_s25  ;;  %s1727_s26 = sld [smem:[#allocation5 + $0xf]] }
  0x52   : > { %v390_v10 = vstv %s1720_s5  ;;  %s1728_s27 = sld [smem:[#allocation5 + $0x10]] }
  0x53   : > { %v263_v46 = vld [vmem:[#allocation2] sm:$0xff]  ;;  %v404_v14 = vstv %s1721_s6  ;;  %s1729_s19 = sld [smem:[#allocation5 + $0x11]] }
  0x54   : > { %267 = vrot.lane.b32.xlu0 %v263_v46, %s2048_s18  ;;  %v264_v47 = vld [vmem:[#allocation2 + $0x8] sm:$0xff]  ;;  %v418_v17 = vstv %s1722_s8  ;;  %s1730_s24 = sld [smem:[#allocation5 + $0x12]] }
  0x55   : > { %v432_v20 = vstv %s1723_s16  ;;  %s1731_s25 = sld [smem:[#allocation5 + $0x13]] }
  0x56   : > { %v460_v26 = vstv %s1725_s20  ;;  %s1732_s5 = sld [smem:[#allocation5 + $0x14]] }
  0x57   : > { %v276_v48 = vld [vmem:[#allocation3] sm:$0xff]  ;;  %v277_v49 = vld [vmem:[#allocation3 + $0x8] sm:$0xff]  ;;  %v482_v30 = vstv %s1727_s26  ;;  %s1734_s6 = sld [smem:[#allocation5 + $0x16]] }
  0x58   : > { %269 = vrot.lane.b32.xlu0 %v264_v47, %s2048_s18  ;;  %280 = vrot.lane.b32.xlu1 %v276_v48, %s2048_s18  ;;  %v496_v34 = vstv %s1728_s27  ;;  %s1735_s8 = sld [smem:[#allocation5 + $0x17]] }
  0x59   : > { %v510_v37 = vstv %s1729_s19  ;;  %s1736_s16 = sld [smem:[#allocation5 + $0x18]] }
  0x5a   : > { %v524_v40 = vstv %s1730_s24  ;;  %s1738_s20 = sld [smem:[#allocation5 + $0x1a]] }
  0x5b   : > { %v538_v43 = vstv %s1731_s25  ;;  %s1739_s26 = sld [smem:[#allocation5 + $0x1b]] }
  0x5c   : > { %282 = vrot.lane.b32.xlu1 %v277_v49, %s2048_s18  ;;  %s1724_s18 = sld [smem:[#allocation5 + $0xc]]  ;;  %v552_v46 = vstv %s1732_s5 }
  0x5d   : > { %s1741_s27 = sld [smem:[#allocation5 + $0x1d]] }
  0x5e   : > { %s1742_s19 = sld [smem:[#allocation5 + $0x1e]] }
  0x5f   : > { %s1743_s24 = sld [smem:[#allocation5 + $0x1f]] }
  0x60   : > { %s1744_s25 = sld [smem:[#allocation5 + $0x20]] }
  0x61   : > { %s1745_s5 = sld [smem:[#allocation5 + $0x21]] }
  0x62   : > { %v446_v23 = vstv %s1724_s18  ;;  %s1737_s18 = sld [smem:[#allocation5 + $0x19]] }
  0xc6   : > { %v268_v50 = vpop.permute.xlu0 %267 }
  0xc7   : > { %274 = vst.msk [vmem:[#allocation4 + $0x3] sm:$0xff] %vm273_vm3, %v268_v50  ;;  %v574_v50 = vstv %s1734_s6  ;;  %s1746_s6 = sld [smem:[#allocation5 + $0x22]] }
  0xca   : > { %v270_v51 = vpop.permute.xlu0 %269  ;;  %v281_v52 = vpop.permute.xlu1 %280 }
  0xcb   : > { %275 = vst.msk [vmem:[#allocation4 + $0xb] sm:$0xff] %vm273_vm3, %v270_v51  ;;  %287 = vst.msk [vmem:[#allocation4 + $0x1b] sm:$0xff] %vm273_vm3, %v281_v52 }
  0xce   : > { %v2226_v54 = vld [vmem:[#allocation4] sm:$0xff]  ;;  %v283_v55 = vpop.permute.xlu1 %282 }
  0xcf   : > { %v299_v56 = vmul.f32 %v298_v53, %v2226_v54  ;;  %288 = vst.msk [vmem:[#allocation4 + $0x23] sm:$0xff] %vm273_vm3, %v283_v55  ;;  %v313_v59 = vmul.f32 %v312_v57, %v2226_v54  ;;  %v327_v62 = vmul.f32 %v326_v61, %v2226_v54  ;;  %v341_v1 = vmul.f32 %v340_v0, %v2226_v54  ;;  %v2250_v9 = vld [vmem:[#allocation4 + $0x1] sm:$0xff] }
  0xd0   : > { %v355_v4 = vmul.f32 %v354_v3, %v2226_v54  ;;  %v369_v7 = vmul.f32 %v368_v6, %v2226_v54  ;;  %v391_v11 = vmul.f32 %v390_v10, %v2250_v9  ;;  %v405_v15 = vmul.f32 %v404_v14, %v2250_v9  ;;  %v2278_v29 = vld [vmem:[#allocation4 + $0x2] sm:$0xff] }
  0xd1   : > { %303 = vrot.lane.b32.xlu0 %v299_v56, %s2049_s23  ;;  %v419_v18 = vmul.f32 %v418_v17, %v2250_v9  ;;  %v433_v21 = vmul.f32 %v432_v20, %v2250_v9  ;;  %v447_v24 = vmul.f32 %v446_v23, %v2250_v9  ;;  %v461_v27 = vmul.f32 %v460_v26, %v2250_v9  ;;  %v2306_v49 = vld [vmem:[#allocation4 + $0x3] sm:$0xff] }
  0xd2   : > { %v2230_v58 = vld [vmem:[#allocation4 + $0x8] sm:$0xff]  ;;  %v483_v31 = vmul.f32 %v482_v30, %v2278_v29  ;;  %v497_v35 = vmul.f32 %v496_v34, %v2278_v29  ;;  %v511_v38 = vmul.f32 %v510_v37, %v2278_v29  ;;  %v525_v41 = vmul.f32 %v524_v40, %v2278_v29 }
  0xd3   : > { %v300_v60 = vmul.f32 %v298_v53, %v2230_v58  ;;  %v314_v63 = vmul.f32 %v312_v57, %v2230_v58  ;;  %v328_v2 = vmul.f32 %v326_v61, %v2230_v58  ;;  %v342_v5 = vmul.f32 %v340_v0, %v2230_v58  ;;  %v2256_v13 = vld [vmem:[#allocation4 + $0x9] sm:$0xff] }
  0xd4   : > { %v356_v8 = vmul.f32 %v354_v3, %v2230_v58  ;;  %v370_v12 = vmul.f32 %v368_v6, %v2230_v58  ;;  %v392_v16 = vmul.f32 %v390_v10, %v2256_v13  ;;  %v406_v19 = vmul.f32 %v404_v14, %v2256_v13  ;;  %v2284_v33 = vld [vmem:[#allocation4 + $0xa] sm:$0xff] }
  0xd5   : > { %317 = vrot.lane.b32.xlu0 %v313_v59, %s2050_s4  ;;  %305 = vrot.lane.b32.xlu1 %v300_v60, %s2049_s23  ;;  %v420_v22 = vmul.f32 %v418_v17, %v2256_v13  ;;  %v434_v25 = vmul.f32 %v432_v20, %v2256_v13  ;;  %v448_v28 = vmul.f32 %v446_v23, %v2256_v13  ;;  %v2312_v53 = vld [vmem:[#allocation4 + $0xb] sm:$0xff]  ;;  %v588_v55 = vstv %s1735_s8  ;;  %s2354_s8 = sld [smem:[#allocation5 + $0x24]] }
  0xd6   : > { %v462_v32 = vmul.f32 %v460_v26, %v2256_v13  ;;  %v484_v36 = vmul.f32 %v482_v30, %v2284_v33  ;;  %v498_v39 = vmul.f32 %v496_v34, %v2284_v33  ;;  %v512_v42 = vmul.f32 %v510_v37, %v2284_v33 }
  0xd7   : > { %v539_v44 = vmul.f32 %v538_v43, %v2278_v29  ;;  %v526_v45 = vmul.f32 %v524_v40, %v2284_v33  ;;  %v553_v47 = vmul.f32 %v552_v46, %v2278_v29  ;;  %v540_v48 = vmul.f32 %v538_v43, %v2284_v33 }
  0xd8   : > { %v575_v51 = vmul.f32 %v574_v50, %v2306_v49  ;;  %v554_v52 = vmul.f32 %v552_v46, %v2284_v33  ;;  %v589_v56 = vmul.f32 %v588_v55, %v2306_v49  ;;  %v576_v57 = vmul.f32 %v574_v50, %v2312_v53 }
  0xd9   : > { %331 = vrot.lane.b32.xlu0 %v327_v62, %s2051_s30  ;;  %319 = vrot.lane.b32.xlu1 %v314_v63, %s2050_s4  ;;  %v602_v59 = vstv %s1736_s16  ;;  %v590_v61 = vmul.f32 %v588_v55, %v2312_v53  ;;  %v616_v62 = vstv %s1737_s18  ;;  %s2360_s16 = sld [smem:[#allocation5 + $0x25]] }
  0xda   : > { %v603_v60 = vmul.f32 %v602_v59, %v2306_v49  ;;  %v617_v63 = vmul.f32 %v616_v62, %v2306_v49  ;;  %v604_v0 = vmul.f32 %v602_v59, %v2312_v53  ;;  %v618_v3 = vmul.f32 %v616_v62, %v2312_v53  ;;  %s2362_s18 = sld [smem:[#allocation5]] }
  0xdb   : > { %v680_v14 = vstv %s1742_s19  ;;  %v694_v17 = vstv %s1743_s24  ;;  %v708_v20 = vstv %s1744_s25  ;;  %v722_v23 = vstv %s1745_s5  ;;  %s2391_s19 = sld [smem:[#allocation5 + $0x7]] }
  0xdc   : > { %v736_v26 = vstv %s1746_s6  ;;  %s2399_s24 = sld [smem:[#allocation5 + $0x29]] }
  0xdd   : > { %345 = vrot.lane.b32.xlu0 %v341_v1, %s2052_s7  ;;  %333 = vrot.lane.b32.xlu1 %v328_v2, %s2051_s30  ;;  %v630_v1 = vstv %s1738_s20  ;;  %s2371_s20 = sld [smem:[#allocation5 + $0x26]] }
  0xde   : > { %v631_v2 = vmul.f32 %v630_v1, %v2306_v49  ;;  %v632_v6 = vmul.f32 %v630_v1, %v2312_v53  ;;  %s2406_s25 = sld [smem:[#allocation5 + $0x2b]] }
  0xdf   : > { %s2415_s5 = sld [smem:[#allocation5 + $0x2c]] }
  0xe0   : > { %v292_v40 = vstv %s2362_s18  ;;  %s2425_s6 = sld [smem:[#allocation5 + $0x2d]] }
  0xe1   : > { %359 = vrot.lane.b32.xlu0 %v355_v4, %s2053_s17  ;;  %347 = vrot.lane.b32.xlu1 %v342_v5, %s2052_s7  ;;  %v644_v4 = vstv %s1739_s26  ;;  %s2380_s26 = sld [smem:[#allocation5 + $0x27]]  ;;  %v294_v55 = vmul.f32 %v292_v40, %v2230_v58 }
  0xe2   : > { %v645_v5 = vmul.f32 %v644_v4, %v2306_v49  ;;  %s2443_s18 = sld [smem:[#allocation5 + $0xe]] }
  0xe3   : > { %v786_v46 = vstv %s2371_s20  ;;  %s2450_s20 = sld [smem:[#allocation5 + $0x30]] }
  0xe5   : > { %373 = vrot.lane.b32.xlu0 %v369_v7, %s2054_s15  ;;  %361 = vrot.lane.b32.xlu1 %v356_v8, %s2053_s17  ;;  %v2334_v7 = vld [vmem:[#allocation4 + $0x4] sm:$0xff]  ;;  %v666_v8 = vstv %s1741_s27  ;;  %s2389_s27 = sld [smem:[#allocation5 + $0x28]] }
  0xe6   : > { %v667_v10 = vmul.f32 %v666_v8, %v2334_v7 }
  0xe9   : > { %395 = vrot.lane.b32.xlu0 %v391_v11, %s2049_s23  ;;  %375 = vrot.lane.b32.xlu1 %v370_v12, %s2054_s15  ;;  %v646_v11 = vmul.f32 %v644_v4, %v2312_v53  ;;  %v2340_v12 = vld [vmem:[#allocation4 + $0xc] sm:$0xff] }
  0xea   : > { %v724_v30 = vmul.f32 %v722_v23, %v2340_v12  ;;  %v738_v37 = vmul.f32 %v736_v26, %v2340_v12 }
  0xeb   : > { %v814_v1 = vstv %s2389_s27  ;;  %s2466_s27 = sld [smem:[#allocation5 + $0x33]] }
  0xed   : > { %409 = vrot.lane.b32.xlu0 %v405_v15, %s2050_s4  ;;  %397 = vrot.lane.b32.xlu1 %v392_v16, %s2049_s23  ;;  %v681_v15 = vmul.f32 %v680_v14, %v2334_v7  ;;  %v668_v16 = vmul.f32 %v666_v8, %v2340_v12 }
  0xf1   : > { %423 = vrot.lane.b32.xlu0 %v419_v18, %s2051_s30  ;;  %411 = vrot.lane.b32.xlu1 %v406_v19, %s2050_s4  ;;  %v695_v18 = vmul.f32 %v694_v17, %v2334_v7  ;;  %v682_v19 = vmul.f32 %v680_v14, %v2340_v12 }
  0xf5   : > { %437 = vrot.lane.b32.xlu0 %v433_v21, %s2052_s7  ;;  %425 = vrot.lane.b32.xlu1 %v420_v22, %s2051_s30  ;;  %v709_v21 = vmul.f32 %v708_v20, %v2334_v7  ;;  %v696_v22 = vmul.f32 %v694_v17, %v2340_v12 }
  0xf9   : > { %451 = vrot.lane.b32.xlu0 %v447_v24, %s2053_s17  ;;  %439 = vrot.lane.b32.xlu1 %v434_v25, %s2052_s7  ;;  %v723_v24 = vmul.f32 %v722_v23, %v2334_v7  ;;  %v710_v25 = vmul.f32 %v708_v20, %v2340_v12  ;;  %v2422_v23 = vld [vmem:[#allocation4 + $0x6] sm:$0xff] }
  0xfd   : > { %465 = vrot.lane.b32.xlu0 %v461_v27, %s2054_s15  ;;  %453 = vrot.lane.b32.xlu1 %v448_v28, %s2053_s17  ;;  %v737_v28 = vmul.f32 %v736_v26, %v2334_v7 }
 0x101   : > { %487 = vrot.lane.b32.xlu0 %v483_v31, %s2049_s23  ;;  %467 = vrot.lane.b32.xlu1 %v462_v32, %s2054_s15  ;;  %v2368_v31 = vld [vmem:[#allocation4 + $0x5] sm:$0xff]  ;;  %v758_v32 = vstv %s2354_s8  ;;  %s2434_s8 = sld [smem:[#allocation5 + $0x2e]] }
 0x102   : > { %v815_v8 = vmul.f32 %v814_v1, %v2368_v31 }
 0x105   : > { %501 = vrot.lane.b32.xlu0 %v497_v35, %s2050_s4  ;;  %489 = vrot.lane.b32.xlu1 %v484_v36, %s2049_s23  ;;  %v759_v36 = vmul.f32 %v758_v32, %v2368_v31 }
 0x109   : > { %515 = vrot.lane.b32.xlu0 %v511_v38, %s2051_s30  ;;  %503 = vrot.lane.b32.xlu1 %v498_v39, %s2050_s4  ;;  %v2377_v38 = vld [vmem:[#allocation4 + $0xd] sm:$0xff]  ;;  %v772_v39 = vstv %s2360_s16  ;;  %s2441_s16 = sld [smem:[#allocation5 + $0x2f]] }
 0x10a   : > { %v773_v43 = vmul.f32 %v772_v39, %v2368_v31 }
 0x10d   : > { %529 = vrot.lane.b32.xlu0 %v525_v41, %s2052_s7  ;;  %517 = vrot.lane.b32.xlu1 %v512_v42, %s2051_s30 }
 0x111   : > { %543 = vrot.lane.b32.xlu0 %v539_v44, %s2053_s17  ;;  %531 = vrot.lane.b32.xlu1 %v526_v45, %s2052_s7  ;;  %v760_v44 = vmul.f32 %v758_v32, %v2377_v38  ;;  %v293_v45 = vmul.f32 %v292_v40, %v2226_v54  ;;  %v878_v40 = vstv %s2425_s6  ;;  %s2501_s6 = sld [smem:[#allocation5 + $0x37]] }
 0x115   : > { %557 = vrot.lane.b32.xlu0 %v553_v47, %s2054_s15  ;;  %545 = vrot.lane.b32.xlu1 %v540_v48, %s2053_s17 }
 0x119   : > { %579 = vrot.lane.b32.xlu0 %v575_v51, %s2049_s23  ;;  %559 = vrot.lane.b32.xlu1 %v554_v52, %s2054_s15  ;;  %v787_v51 = vmul.f32 %v786_v46, %v2368_v31  ;;  %v774_v52 = vmul.f32 %v772_v39, %v2377_v38 }
 0x11d   : > { %593 = vrot.lane.b32.xlu0 %v589_v56, %s2050_s4  ;;  %581 = vrot.lane.b32.xlu1 %v576_v57, %s2049_s23  ;;  %v800_v56 = vstv %s2380_s26  ;;  %s2457_s26 = sld [smem:[#allocation5 + $0x32]] }
 0x11e   : > { %v801_v62 = vmul.f32 %v800_v56, %v2368_v31 }
 0x121   : > { %607 = vrot.lane.b32.xlu0 %v603_v60, %s2051_s30  ;;  %595 = vrot.lane.b32.xlu1 %v590_v61, %s2050_s4 }
 0x125   : > { %621 = vrot.lane.b32.xlu0 %v617_v63, %s2052_s7  ;;  %609 = vrot.lane.b32.xlu1 %v604_v0, %s2051_s30  ;;  %v788_v63 = vmul.f32 %v786_v46, %v2377_v38 }
 0x129   : > { %635 = vrot.lane.b32.xlu0 %v631_v2, %s2053_s17  ;;  %623 = vrot.lane.b32.xlu1 %v618_v3, %s2052_s7  ;;  %v384_v2 = vstv %s2391_s19  ;;  %s2476_s19 = sld [smem:[#allocation5 + $0x34]] }
 0x12d   : > { %649 = vrot.lane.b32.xlu0 %v645_v5, %s2054_s15  ;;  %637 = vrot.lane.b32.xlu1 %v632_v6, %s2053_s17 }
 0x131   : > { %671 = vrot.lane.b32.xlu0 %v667_v10, %s2049_s23  ;;  %651 = vrot.lane.b32.xlu1 %v646_v11, %s2054_s15  ;;  %v802_v10 = vmul.f32 %v800_v56, %v2377_v38  ;;  %v385_v11 = vmul.f32 %v384_v2, %v2250_v9  ;;  %v386_v9 = vmul.f32 %v384_v2, %v2256_v13  ;;  %v864_v13 = vstv %s2415_s5  ;;  %s2494_s5 = sld [smem:[#allocation5 + $0x15]] }
 0x135   : > { %685 = vrot.lane.b32.xlu0 %v681_v15, %s2050_s4  ;;  %673 = vrot.lane.b32.xlu1 %v668_v16, %s2049_s23  ;;  %v828_v16 = vstv %s2399_s24  ;;  %s2485_s24 = sld [smem:[#allocation5 + $0x35]] }
 0x136   : > { %v830_v32 = vmul.f32 %v828_v16, %v2377_v38 }
 0x139   : > { %699 = vrot.lane.b32.xlu0 %v695_v18, %s2051_s30  ;;  %687 = vrot.lane.b32.xlu1 %v682_v19, %s2050_s4 }
 0x13d   : > { %713 = vrot.lane.b32.xlu0 %v709_v21, %s2052_s7  ;;  %701 = vrot.lane.b32.xlu1 %v696_v22, %s2051_s30  ;;  %v829_v21 = vmul.f32 %v828_v16, %v2368_v31  ;;  %v816_v22 = vmul.f32 %v814_v1, %v2377_v38 }
 0x141   : > { %727 = vrot.lane.b32.xlu0 %v723_v24, %s2053_s17  ;;  %715 = vrot.lane.b32.xlu1 %v710_v25, %s2052_s7  ;;  %v850_v25 = vstv %s2406_s25  ;;  %s2492_s25 = sld [smem:[#allocation5 + $0x36]] }
 0x143   : > { %v304_v27 = vpop.permute.xlu0 %303 }
 0x144   : > { %v309_v47 = vadd.f32 %v304_v27, %v293_v45 }
 0x145   : > { %741 = vrot.lane.b32.xlu0 %v737_v28, %s2054_s15  ;;  %729 = vrot.lane.b32.xlu1 %v724_v30, %s2053_s17  ;;  %v851_v30 = vmul.f32 %v850_v25, %v2422_v23 }
 0x147   : > { %v306_v34 = vpop.permute.xlu1 %305  ;;  %v318_v35 = vpop.permute.xlu0 %317 }
 0x148   : > { %v323_v54 = vadd.f32 %v318_v35, %v309_v47  ;;  %v310_v57 = vadd.f32 %v306_v34, %v294_v55  ;;  %v2431_v34 = vld [vmem:[#allocation4 + $0xe] sm:$0xff]  ;;  %v892_v47 = vstv %s2434_s8  ;;  %s2508_s8 = sld [smem:[#allocation5 + $0x39]] }
 0x149   : > { %763 = vrot.lane.b32.xlu0 %v759_v36, %s2049_s23  ;;  %743 = vrot.lane.b32.xlu1 %v738_v37, %s2054_s15  ;;  %v865_v37 = vmul.f32 %v864_v13, %v2422_v23  ;;  %v852_v39 = vmul.f32 %v850_v25, %v2431_v34  ;;  %v866_v45 = vmul.f32 %v864_v13, %v2431_v34 }
 0x14a   : > { %v893_v55 = vmul.f32 %v892_v47, %v2422_v23  ;;  %v894_v1 = vmul.f32 %v892_v47, %v2431_v34 }
 0x14b   : > { %v320_v41 = vpop.permute.xlu1 %319  ;;  %v332_v42 = vpop.permute.xlu0 %331 }
 0x14c   : > { %v337_v59 = vadd.f32 %v332_v42, %v323_v54  ;;  %v324_v0 = vadd.f32 %v320_v41, %v310_v57  ;;  %v880_v54 = vmul.f32 %v878_v40, %v2431_v34 }
 0x14d   : > { %777 = vrot.lane.b32.xlu0 %v773_v43, %s2050_s4  ;;  %765 = vrot.lane.b32.xlu1 %v760_v44, %s2049_s23  ;;  %v879_v44 = vmul.f32 %v878_v40, %v2422_v23  ;;  %v984_v40 = vstv %s2485_s24  ;;  %s2559_s24 = sld [smem:[#allocation5 + $0x40]] }
 0x14f   : > { %v334_v48 = vpop.permute.xlu1 %333  ;;  %v346_v50 = vpop.permute.xlu0 %345 }
 0x150   : > { %v351_v58 = vadd.f32 %v346_v50, %v337_v59  ;;  %v338_v3 = vadd.f32 %v334_v48, %v324_v0  ;;  %v906_v59 = vstv %s2441_s16  ;;  %s2517_s16 = sld [smem:[#allocation5 + $0x3a]] }
 0x151   : > { %791 = vrot.lane.b32.xlu0 %v787_v51, %s2051_s30  ;;  %779 = vrot.lane.b32.xlu1 %v774_v52, %s2050_s4 }
 0x153   : > { %v348_v60 = vpop.permute.xlu1 %347  ;;  %v360_v61 = vpop.permute.xlu0 %359 }
 0x154   : > { %v365_v4 = vadd.f32 %v360_v61, %v351_v58  ;;  %v352_v14 = vadd.f32 %v348_v60, %v338_v3  ;;  %v476_v60 = vstv %s2443_s18  ;;  %v907_v58 = vmul.f32 %v906_v59, %v2422_v23  ;;  %s2527_s18 = sld [smem:[#allocation5 + $0x3b]] }
 0x155   : > { %805 = vrot.lane.b32.xlu0 %v801_v62, %s2052_s7  ;;  %793 = vrot.lane.b32.xlu1 %v788_v63, %s2051_s30  ;;  %v477_v2 = vmul.f32 %v476_v60, %v2278_v29  ;;  %v478_v29 = vmul.f32 %v476_v60, %v2284_v33  ;;  %v2483_v33 = vld [vmem:[#allocation4 + $0x20] sm:$0xff] }
 0x157   : > { %v362_v5 = vpop.permute.xlu1 %361  ;;  %v374_v6 = vpop.permute.xlu0 %373 }
 0x158   : > { %v379_v15 = vadd.f32 %v374_v6, %v365_v4  ;;  %v366_v17 = vadd.f32 %v362_v5, %v352_v14  ;;  %v920_v5 = vstv %s2450_s20  ;;  %s2536_s20 = sld [smem:[#allocation5 + $0x3c]] }
 0x159   : > { %819 = vrot.lane.b32.xlu0 %v815_v8, %s2053_s17  ;;  %807 = vrot.lane.b32.xlu1 %v802_v10, %s2052_s7  ;;  %v921_v14 = vmul.f32 %v920_v5, %v2422_v23 }
 0x15a   : > { %v387_v18 = vadd.f32 %v385_v11, %v379_v15  ;;  %v908_v15 = vmul.f32 %v906_v59, %v2431_v34  ;;  %v986_v59 = vmul.f32 %v984_v40, %v2483_v33 }
 0x15b   : > { %v376_v19 = vpop.permute.xlu1 %375  ;;  %v396_v20 = vpop.permute.xlu0 %395 }
 0x15c   : > { %v380_v24 = vadd.f32 %v376_v19, %v366_v17  ;;  %v401_v41 = vadd.f32 %v396_v20, %v387_v18  ;;  %v2473_v17 = vld [vmem:[#allocation4 + $0x18] sm:$0xff]  ;;  %v942_v18 = vstv %s2457_s26  ;;  %s2543_s26 = sld [smem:[#allocation5 + $0x3d]] }
 0x15d   : > { %833 = vrot.lane.b32.xlu0 %v829_v21, %s2054_s15  ;;  %821 = vrot.lane.b32.xlu1 %v816_v22, %s2053_s17  ;;  %v943_v22 = vmul.f32 %v942_v18, %v2473_v17 }
 0x15e   : > { %v388_v26 = vadd.f32 %v386_v9, %v380_v24  ;;  %v922_v9 = vmul.f32 %v920_v5, %v2431_v34  ;;  %v956_v24 = vstv %s2466_s27  ;;  %s2545_s27 = sld [smem:[#allocation5 + $0x1c]] }
 0x15f   : > { %v398_v27 = vpop.permute.xlu1 %397  ;;  %v410_v28 = vpop.permute.xlu0 %409 }
 0x160   : > { %v415_v46 = vadd.f32 %v410_v28, %v401_v41  ;;  %v402_v48 = vadd.f32 %v398_v27, %v388_v26  ;;  %v957_v27 = vmul.f32 %v956_v24, %v2473_v17  ;;  %v944_v28 = vmul.f32 %v942_v18, %v2483_v33 }
 0x161   : > { %855 = vrot.lane.b32.xlu0 %v851_v30, %s2049_s23  ;;  %835 = vrot.lane.b32.xlu1 %v830_v32, %s2054_s15  ;;  %v970_v30 = vstv %s2476_s19  ;;  %s2552_s19 = sld [smem:[#allocation5 + $0x3e]] }
 0x163   : > { %v412_v35 = vpop.permute.xlu1 %411  ;;  %v424_v36 = vpop.permute.xlu0 %423 }
 0x164   : > { %v429_v50 = vadd.f32 %v424_v36, %v415_v46  ;;  %v416_v56 = vadd.f32 %v412_v35, %v402_v48  ;;  %v971_v36 = vmul.f32 %v970_v30, %v2473_v17  ;;  %v972_v46 = vmul.f32 %v970_v30, %v2483_v33 }
 0x165   : > { %869 = vrot.lane.b32.xlu0 %v865_v37, %s2050_s4  ;;  %857 = vrot.lane.b32.xlu1 %v852_v39, %s2049_s23  ;;  %v958_v37 = vmul.f32 %v956_v24, %v2483_v33  ;;  %v1076_v30 = vstv %s2536_s20  ;;  %s2610_s20 = sld [smem:[#allocation5 + $0x47]] }
 0x167   : > { %v426_v42 = vpop.permute.xlu1 %425  ;;  %v438_v43 = vpop.permute.xlu0 %437 }
 0x168   : > { %v443_v57 = vadd.f32 %v438_v43, %v429_v50  ;;  %v430_v61 = vadd.f32 %v426_v42, %v416_v56  ;;  %v998_v50 = vstv %s2492_s25  ;;  %s2568_s25 = sld [smem:[#allocation5 + $0x41]] }
 0x169   : > { %883 = vrot.lane.b32.xlu0 %v879_v44, %s2051_s30  ;;  %871 = vrot.lane.b32.xlu1 %v866_v45, %s2050_s4  ;;  %v985_v45 = vmul.f32 %v984_v40, %v2473_v17 }
 0x16b   : > { %v440_v51 = vpop.permute.xlu1 %439  ;;  %v452_v52 = vpop.permute.xlu0 %451 }
 0x16c   : > { %v457_v62 = vadd.f32 %v452_v52, %v443_v57  ;;  %v444_v3 = vadd.f32 %v440_v51, %v430_v61  ;;  %v568_v51 = vstv %s2494_s5  ;;  %v999_v57 = vmul.f32 %v998_v50, %v2473_v17  ;;  %s2578_s5 = sld [smem:[#allocation5 + $0x42]] }
 0x16d   : > { %897 = vrot.lane.b32.xlu0 %v893_v55, %s2052_s7  ;;  %885 = vrot.lane.b32.xlu1 %v880_v54, %s2051_s30  ;;  %v569_v60 = vmul.f32 %v568_v51, %v2306_v49  ;;  %v570_v49 = vmul.f32 %v568_v51, %v2312_v53  ;;  %v1048_v53 = vstv %s2517_s16  ;;  %s2596_s16 = sld [smem:[#allocation5 + $0x23]] }
 0x16f   : > { %v454_v63 = vpop.permute.xlu1 %453  ;;  %v466_v0 = vpop.permute.xlu0 %465 }
 0x170   : > { %v471_v4 = vadd.f32 %v466_v0, %v457_v62  ;;  %v458_v6 = vadd.f32 %v454_v63, %v444_v3  ;;  %v1012_v63 = vstv %s2501_s6  ;;  %s2587_s6 = sld [smem:[#allocation5 + $0x43]] }
 0x171   : > { %911 = vrot.lane.b32.xlu0 %v907_v58, %s2053_s17  ;;  %899 = vrot.lane.b32.xlu1 %v894_v1, %s2052_s7  ;;  %v1013_v3 = vmul.f32 %v1012_v63, %v2473_v17 }
 0x172   : > { %v479_v8 = vadd.f32 %v477_v2, %v471_v4  ;;  %v1000_v4 = vmul.f32 %v998_v50, %v2483_v33 }
 0x173   : > { %v468_v10 = vpop.permute.xlu1 %467  ;;  %v488_v11 = vpop.permute.xlu0 %487 }
 0x174   : > { %v472_v16 = vadd.f32 %v468_v10, %v458_v6  ;;  %v493_v32 = vadd.f32 %v488_v11, %v479_v8  ;;  %v2524_v6 = vld [vmem:[#allocation4 + $0x19] sm:$0xff]  ;;  %v1034_v8 = vstv %s2508_s8  ;;  %s2594_s8 = sld [smem:[#allocation5 + $0x44]] }
 0x175   : > { %925 = vrot.lane.b32.xlu0 %v921_v14, %s2054_s15  ;;  %913 = vrot.lane.b32.xlu1 %v908_v15, %s2053_s17  ;;  %v1035_v15 = vmul.f32 %v1034_v8, %v2524_v6 }
 0x176   : > { %v480_v19 = vadd.f32 %v478_v29, %v472_v16  ;;  %v1014_v29 = vmul.f32 %v1012_v63, %v2483_v33  ;;  %v2533_v16 = vld [vmem:[#allocation4 + $0x21] sm:$0xff] }
 0x177   : > { %v490_v20 = vpop.permute.xlu1 %489  ;;  %v502_v21 = vpop.permute.xlu0 %501 }
 0x178   : > { %v507_v39 = vadd.f32 %v502_v21, %v493_v32  ;;  %v494_v41 = vadd.f32 %v490_v20, %v480_v19  ;;  %v1036_v20 = vmul.f32 %v1034_v8, %v2533_v16  ;;  %v1049_v21 = vmul.f32 %v1048_v53, %v2524_v6 }
 0x179   : > { %947 = vrot.lane.b32.xlu0 %v943_v22, %s2049_s23  ;;  %927 = vrot.lane.b32.xlu1 %v922_v9, %s2054_s15  ;;  %v1062_v22 = vstv %s2527_s18  ;;  %s2603_s18 = sld [smem:[#allocation5 + $0x45]] }
 0x17b   : > { %v504_v25 = vpop.permute.xlu1 %503  ;;  %v516_v26 = vpop.permute.xlu0 %515 }
 0x17c   : > { %v521_v42 = vadd.f32 %v516_v26, %v507_v39  ;;  %v508_v47 = vadd.f32 %v504_v25, %v494_v41  ;;  %v1050_v26 = vmul.f32 %v1048_v53, %v2533_v16  ;;  %v1077_v39 = vmul.f32 %v1076_v30, %v2524_v6 }
 0x17d   : > { %961 = vrot.lane.b32.xlu0 %v957_v27, %s2050_s4  ;;  %949 = vrot.lane.b32.xlu1 %v944_v28, %s2049_s23  ;;  %v1063_v27 = vmul.f32 %v1062_v22, %v2524_v6 }
 0x17f   : > { %v518_v13 = vpop.permute.xlu1 %517  ;;  %v530_v35 = vpop.permute.xlu0 %529 }
 0x180   : > { %v535_v48 = vadd.f32 %v530_v35, %v521_v42  ;;  %v522_v52 = vadd.f32 %v518_v13, %v508_v47  ;;  %v1090_v42 = vstv %s2543_s26  ;;  %s2619_s26 = sld [smem:[#allocation5 + $0x48]] }
 0x181   : > { %975 = vrot.lane.b32.xlu0 %v971_v36, %s2051_s30  ;;  %963 = vrot.lane.b32.xlu1 %v958_v37, %s2050_s4  ;;  %v1064_v37 = vmul.f32 %v1062_v22, %v2533_v16  ;;  %v1091_v50 = vmul.f32 %v1090_v42, %v2524_v6  ;;  %v1168_v22 = vstv %s2587_s6  ;;  %s2661_s6 = sld [smem:[#allocation5 + $0x4e]] }
 0x183   : > { %v532_v43 = vpop.permute.xlu1 %531  ;;  %v544_v44 = vpop.permute.xlu0 %543 }
 0x184   : > { %v549_v55 = vadd.f32 %v544_v44, %v535_v48  ;;  %v536_v61 = vadd.f32 %v532_v43, %v522_v52  ;;  %v660_v43 = vstv %s2545_s27  ;;  %v1078_v48 = vmul.f32 %v1076_v30, %v2533_v16  ;;  %s2629_s27 = sld [smem:[#allocation5 + $0x49]] }
 0x185   : > { %989 = vrot.lane.b32.xlu0 %v985_v45, %s2052_s7  ;;  %977 = vrot.lane.b32.xlu1 %v972_v46, %s2051_s30  ;;  %v661_v51 = vmul.f32 %v660_v43, %v2334_v7  ;;  %v662_v7 = vmul.f32 %v660_v43, %v2340_v12  ;;  %v1140_v12 = vstv %s2568_s25  ;;  %s2647_s25 = sld [smem:[#allocation5 + $0x2a]] }
 0x187   : > { %v546_v54 = vpop.permute.xlu1 %545  ;;  %v558_v56 = vpop.permute.xlu0 %557 }
 0x188   : > { %v563_v62 = vadd.f32 %v558_v56, %v549_v55  ;;  %v550_v0 = vadd.f32 %v546_v54, %v536_v61  ;;  %v1104_v54 = vstv %s2552_s19  ;;  %v1092_v61 = vmul.f32 %v1090_v42, %v2533_v16  ;;  %s2638_s19 = sld [smem:[#allocation5 + $0x4a]] }
 0x189   : > { %1003 = vrot.lane.b32.xlu0 %v999_v57, %s2053_s17  ;;  %991 = vrot.lane.b32.xlu1 %v986_v59, %s2052_s7 }
 0x18a   : > { %v571_v58 = vadd.f32 %v569_v60, %v563_v62  ;;  %v1105_v62 = vmul.f32 %v1104_v54, %v2524_v6 }
 0x18b   : > { %v560_v1 = vpop.permute.xlu1 %559  ;;  %v580_v2 = vpop.permute.xlu0 %579 }
 0x18c   : > { %v564_v5 = vadd.f32 %v560_v1, %v550_v0  ;;  %v585_v9 = vadd.f32 %v580_v2, %v571_v58  ;;  %v2575_v0 = vld [vmem:[#allocation4 + $0x1a] sm:$0xff]  ;;  %v1126_v58 = vstv %s2559_s24  ;;  %s2645_s24 = sld [smem:[#allocation5 + $0x4b]] }
 0x18d   : > { %1017 = vrot.lane.b32.xlu0 %v1013_v3, %s2054_s15  ;;  %1005 = vrot.lane.b32.xlu1 %v1000_v4, %s2053_s17  ;;  %v1106_v4 = vmul.f32 %v1104_v54, %v2533_v16 }
 0x18e   : > { %v572_v10 = vadd.f32 %v570_v49, %v564_v5  ;;  %v1127_v49 = vmul.f32 %v1126_v58, %v2575_v0  ;;  %v2584_v5 = vld [vmem:[#allocation4 + $0x22] sm:$0xff] }
 0x18f   : > { %v582_v11 = vpop.permute.xlu1 %581  ;;  %v594_v14 = vpop.permute.xlu0 %593 }
 0x190   : > { %v599_v28 = vadd.f32 %v594_v14, %v585_v9  ;;  %v586_v32 = vadd.f32 %v582_v11, %v572_v10  ;;  %v1128_v11 = vmul.f32 %v1126_v58, %v2584_v5  ;;  %v1141_v14 = vmul.f32 %v1140_v12, %v2575_v0 }
 0x191   : > { %1039 = vrot.lane.b32.xlu0 %v1035_v15, %s2049_s23  ;;  %1019 = vrot.lane.b32.xlu1 %v1014_v29, %s2054_s15  ;;  %v1154_v15 = vstv %s2578_s5  ;;  %s2654_s5 = sld [smem:[#allocation5 + $0x4c]] }
 0x193   : > { %v596_v18 = vpop.permute.xlu1 %595  ;;  %v608_v19 = vpop.permute.xlu0 %607 }
 0x194   : > { %v613_v13 = vadd.f32 %v608_v19, %v599_v28  ;;  %v600_v40 = vadd.f32 %v596_v18, %v586_v32  ;;  %v1142_v19 = vmul.f32 %v1140_v12, %v2584_v5  ;;  %v1169_v28 = vmul.f32 %v1168_v22, %v2575_v0 }
 0x195   : > { %1041 = vrot.lane.b32.xlu1 %v1036_v20, %s2049_s23  ;;  %1053 = vrot.lane.b32.xlu0 %v1049_v21, %s2050_s4  ;;  %v1155_v20 = vmul.f32 %v1154_v15, %v2575_v0 }
 0x197   : > { %v610_v24 = vpop.permute.xlu1 %609  ;;  %v622_v25 = vpop.permute.xlu0 %621 }
 0x198   : > { %v627_v41 = vadd.f32 %v622_v25, %v613_v13  ;;  %v614_v44 = vadd.f32 %v610_v24, %v600_v40  ;;  %v1182_v13 = vstv %s2594_s8  ;;  %s2670_s8 = sld [smem:[#allocation5 + $0x4f]] }
 0x199   : > { %1055 = vrot.lane.b32.xlu1 %v1050_v26, %s2050_s4  ;;  %1067 = vrot.lane.b32.xlu0 %v1063_v27, %s2051_s30  ;;  %v1156_v27 = vmul.f32 %v1154_v15, %v2584_v5  ;;  %v1183_v42 = vmul.f32 %v1182_v13, %v2575_v0  ;;  %v1260_v15 = vstv %s2638_s19  ;;  %s2712_s19 = sld [smem:[#allocation5 + $0x55]] }
 0x19b   : > { %v624_v35 = vpop.permute.xlu1 %623  ;;  %v636_v36 = vpop.permute.xlu0 %635 }
 0x19c   : > { %v641_v45 = vadd.f32 %v636_v36, %v627_v41  ;;  %v628_v52 = vadd.f32 %v624_v35, %v614_v44  ;;  %v752_v35 = vstv %s2596_s16  ;;  %v1170_v41 = vmul.f32 %v1168_v22, %v2584_v5  ;;  %s2680_s16 = sld [smem:[#allocation5 + $0x50]] }
 0x19d   : > { %1069 = vrot.lane.b32.xlu1 %v1064_v37, %s2051_s30  ;;  %1081 = vrot.lane.b32.xlu0 %v1077_v39, %s2052_s7  ;;  %v753_v43 = vmul.f32 %v752_v35, %v2368_v31  ;;  %v754_v31 = vmul.f32 %v752_v35, %v2377_v38  ;;  %v1232_v38 = vstv %s2619_s26  ;;  %s2700_s26 = sld [smem:[#allocation5 + $0x31]] }
 0x19f   : > { %v638_v46 = vpop.permute.xlu1 %637  ;;  %v650_v47 = vpop.permute.xlu0 %649 }
 0x1a0   : > { %v655_v55 = vadd.f32 %v650_v47, %v641_v45  ;;  %v642_v56 = vadd.f32 %v638_v46, %v628_v52  ;;  %v1196_v46 = vstv %s2603_s18  ;;  %v1184_v52 = vmul.f32 %v1182_v13, %v2584_v5  ;;  %s2689_s18 = sld [smem:[#allocation5 + $0x51]] }
 0x1a1   : > { %1083 = vrot.lane.b32.xlu1 %v1078_v48, %s2052_s7  ;;  %1095 = vrot.lane.b32.xlu0 %v1091_v50, %s2053_s17 }
 0x1a2   : > { %v663_v57 = vadd.f32 %v661_v51, %v655_v55  ;;  %v1197_v55 = vmul.f32 %v1196_v46, %v2575_v0 }
 0x1a3   : > { %v652_v59 = vpop.permute.xlu1 %651  ;;  %v672_v60 = vpop.permute.xlu0 %671 }
 0x1a4   : > { %v656_v63 = vadd.f32 %v652_v59, %v642_v56  ;;  %v677_v29 = vadd.f32 %v672_v60, %v663_v57  ;;  %v2626_v56 = vld [vmem:[#allocation4 + $0x1b] sm:$0xff]  ;;  %v1218_v57 = vstv %s2610_s20  ;;  %s2696_s20 = sld [smem:[#allocation5 + $0x52]] }
 0x1a5   : > { %1097 = vrot.lane.b32.xlu1 %v1092_v61, %s2053_s17  ;;  %1109 = vrot.lane.b32.xlu0 %v1105_v62, %s2054_s15  ;;  %v1198_v62 = vmul.f32 %v1196_v46, %v2584_v5 }
 0x1a6   : > { %v664_v1 = vadd.f32 %v662_v7, %v656_v63  ;;  %v1219_v7 = vmul.f32 %v1218_v57, %v2626_v56  ;;  %v2635_v63 = vld [vmem:[#allocation4 + $0x23] sm:$0xff] }
 0x1a7   : > { %v674_v2 = vpop.permute.xlu1 %673  ;;  %v686_v3 = vpop.permute.xlu0 %685 }
 0x1a8   : > { %v691_v21 = vadd.f32 %v686_v3, %v677_v29  ;;  %v678_v9 = vadd.f32 %v674_v2, %v664_v1  ;;  %v1220_v2 = vmul.f32 %v1218_v57, %v2635_v63  ;;  %v1233_v3 = vmul.f32 %v1232_v38, %v2626_v56 }
 0x1a9   : > { %1111 = vrot.lane.b32.xlu1 %v1106_v4, %s2054_s15  ;;  %1131 = vrot.lane.b32.xlu0 %v1127_v49, %s2049_s23  ;;  %v1246_v4 = vstv %s2629_s27  ;;  %s2705_s27 = sld [smem:[#allocation5 + $0x53]] }
 0x1ab   : > { %v688_v8 = vpop.permute.xlu1 %687  ;;  %v700_v10 = vpop.permute.xlu0 %699 }
 0x1ac   : > { %v705_v24 = vadd.f32 %v700_v10, %v691_v21  ;;  %v692_v30 = vadd.f32 %v688_v8, %v678_v9  ;;  %v1234_v10 = vmul.f32 %v1232_v38, %v2635_v63  ;;  %v1261_v21 = vmul.f32 %v1260_v15, %v2626_v56 }
 0x1ad   : > { %1133 = vrot.lane.b32.xlu1 %v1128_v11, %s2049_s23  ;;  %1145 = vrot.lane.b32.xlu0 %v1141_v14, %s2050_s4  ;;  %v1247_v11 = vmul.f32 %v1246_v4, %v2626_v56 }
 0x1af   : > { %v702_v53 = vpop.permute.xlu1 %701  ;;  %v714_v18 = vpop.permute.xlu0 %713 }
 0x1b0   : > { %v719_v32 = vadd.f32 %v714_v18, %v705_v24  ;;  %v706_v36 = vadd.f32 %v702_v53, %v692_v30  ;;  %v1274_v24 = vstv %s2645_s24  ;;  %s2721_s24 = sld [smem:[#allocation5 + $0x56]] }
 0x1b1   : > { %1147 = vrot.lane.b32.xlu1 %v1142_v19, %s2050_s4  ;;  %1159 = vrot.lane.b32.xlu0 %v1155_v20, %s2051_s30  ;;  %v1248_v20 = vmul.f32 %v1246_v4, %v2635_v63  ;;  %v1275_v13 = vmul.f32 %v1274_v24, %v2626_v56 }
 0x1b3   : > { %v716_v25 = vpop.permute.xlu1 %715  ;;  %v728_v26 = vpop.permute.xlu0 %727 }
 0x1b4   : > { %v733_v37 = vadd.f32 %v728_v26, %v719_v32  ;;  %v720_v44 = vadd.f32 %v716_v25, %v706_v36  ;;  %v844_v25 = vstv %s2647_s25  ;;  %v1262_v32 = vmul.f32 %v1260_v15, %v2635_v63  ;;  %s2731_s25 = sld [smem:[#allocation5 + $0x57]] }
 0x1b5   : > { %1161 = vrot.lane.b32.xlu1 %v1156_v27, %s2051_s30  ;;  %1173 = vrot.lane.b32.xlu0 %v1169_v28, %s2052_s7  ;;  %v845_v35 = vmul.f32 %v844_v25, %v2422_v23  ;;  %v846_v23 = vmul.f32 %v844_v25, %v2431_v34 }
 0x1b7   : > { %v730_v39 = vpop.permute.xlu1 %729  ;;  %v742_v40 = vpop.permute.xlu0 %741 }
 0x1b8   : > { %v747_v45 = vadd.f32 %v742_v40, %v733_v37  ;;  %v734_v47 = vadd.f32 %v730_v39, %v720_v44  ;;  %v1288_v39 = vstv %s2654_s5  ;;  %v1276_v44 = vmul.f32 %v1274_v24, %v2635_v63  ;;  %s2740_s5 = sld [smem:[#allocation5 + $0x58]] }
 0x1b9   : > { %1175 = vrot.lane.b32.xlu1 %v1170_v41, %s2052_s7  ;;  %1187 = vrot.lane.b32.xlu0 %v1183_v42, %s2053_s17 }
 0x1ba   : > { %v755_v48 = vadd.f32 %v753_v43, %v747_v45  ;;  %v1289_v45 = vmul.f32 %v1288_v39, %v2626_v56 }
 0x1bb   : > { %v744_v50 = vpop.permute.xlu1 %743  ;;  %v764_v51 = vpop.permute.xlu0 %763 }
 0x1bc   : > { %v748_v54 = vadd.f32 %v744_v50, %v734_v47  ;;  %v769_v49 = vadd.f32 %v764_v51, %v755_v48  ;;  %v2677_v48 = vld [vmem:[#allocation4 + $0x1c] sm:$0xff]  ;;  %v1310_v50 = vstv %s2661_s6  ;;  %s2747_s6 = sld [smem:[#allocation5 + $0x59]] }
 0x1bd   : > { %1189 = vrot.lane.b32.xlu1 %v1184_v52, %s2053_s17  ;;  %1201 = vrot.lane.b32.xlu0 %v1197_v55, %s2054_s15  ;;  %v1311_v34 = vmul.f32 %v1310_v50, %v2677_v48 }
 0x1be   : > { %v756_v59 = vadd.f32 %v754_v31, %v748_v54  ;;  %v1290_v31 = vmul.f32 %v1288_v39, %v2635_v63 }
 0x1bf   : > { %v766_v60 = vpop.permute.xlu1 %765  ;;  %v778_v61 = vpop.permute.xlu0 %777 }
 0x1c0   : > { %v783_v14 = vadd.f32 %v778_v61, %v769_v49  ;;  %v770_v29 = vadd.f32 %v766_v60, %v756_v59  ;;  %v2686_v59 = vld [vmem:[#allocation4 + $0x24] sm:$0xff]  ;;  %v1324_v60 = vstv %s2670_s8  ;;  %s2751_s8 = sld [smem:[#allocation5 + $0x38]] }
 0x1c1   : > { %1203 = vrot.lane.b32.xlu1 %v1198_v62, %s2054_s15  ;;  %1223 = vrot.lane.b32.xlu0 %v1219_v7, %s2049_s23  ;;  %v1312_v7 = vmul.f32 %v1310_v50, %v2686_v59  ;;  %v1325_v38 = vmul.f32 %v1324_v60, %v2677_v48  ;;  %v1326_v49 = vmul.f32 %v1324_v60, %v2686_v59  ;;  %v2737_v50 = vld [vmem:[#allocation4 + $0x25] sm:$0xff]  ;;  %v1430_v60 = vstv %s2731_s25  ;;  %s2807_s25 = sld [smem:[#allocation5 + $0x61]] }
 0x1c3   : > { %v780_v58 = vpop.permute.xlu1 %779  ;;  %v792_v1 = vpop.permute.xlu0 %791 }
 0x1c4   : > { %v797_v53 = vadd.f32 %v792_v1, %v783_v14  ;;  %v784_v22 = vadd.f32 %v780_v58, %v770_v29 }
 0x1c5   : > { %1225 = vrot.lane.b32.xlu1 %v1220_v2, %s2049_s23  ;;  %1237 = vrot.lane.b32.xlu0 %v1233_v3, %s2050_s4  ;;  %v1338_v2 = vstv %s2680_s16  ;;  %s2756_s16 = sld [smem:[#allocation5 + $0x5a]] }
 0x1c6   : > { %v1340_v29 = vmul.f32 %v1338_v2, %v2686_v59 }
 0x1c7   : > { %v794_v12 = vpop.permute.xlu1 %793  ;;  %v806_v8 = vpop.permute.xlu0 %805 }
 0x1c8   : > { %v811_v9 = vadd.f32 %v806_v8, %v797_v53  ;;  %v798_v26 = vadd.f32 %v794_v12, %v784_v22  ;;  %v1339_v12 = vmul.f32 %v1338_v2, %v2677_v48  ;;  %v1444_v2 = vstv %s2740_s5 }
 0x1c9   : > { %1239 = vrot.lane.b32.xlu1 %v1234_v10, %s2050_s4  ;;  %1251 = vrot.lane.b32.xlu0 %v1247_v11, %s2051_s30  ;;  %v1352_v11 = vstv %s2689_s18  ;;  %s2763_s18 = sld [smem:[#allocation5 + $0x5c]] }
 0x1ca   : > { %v1353_v53 = vmul.f32 %v1352_v11, %v2677_v48  ;;  %v1354_v24 = vmul.f32 %v1352_v11, %v2686_v59  ;;  %v1028_v11 = vstv %s2751_s8 }
 0x1cb   : > { %v808_v18 = vpop.permute.xlu1 %807  ;;  %v820_v19 = vpop.permute.xlu0 %819 }
 0x1cc   : > { %v825_v27 = vadd.f32 %v820_v19, %v811_v9  ;;  %v812_v36 = vadd.f32 %v808_v18, %v798_v26 }
 0x1cd   : > { %1253 = vrot.lane.b32.xlu1 %v1248_v20, %s2051_s30  ;;  %1265 = vrot.lane.b32.xlu0 %v1261_v21, %s2052_s7  ;;  %v1366_v20 = vstv %s2696_s20  ;;  %v936_v21 = vstv %s2700_s26  ;;  %s2772_s20 = sld [smem:[#allocation5 + $0x5d]] }
 0x1ce   : > { %v1367_v25 = vmul.f32 %v1366_v20, %v2677_v48  ;;  %v938_v39 = vmul.f32 %v936_v21, %v2483_v33  ;;  %s2782_s26 = sld [smem:[#allocation5 + $0x5e]] }
 0x1cf   : > { %v822_v28 = vpop.permute.xlu1 %821  ;;  %v834_v30 = vpop.permute.xlu0 %833 }
 0x1d0   : > { %v839_v37 = vadd.f32 %v834_v30, %v825_v27  ;;  %v826_v40 = vadd.f32 %v822_v28, %v812_v36  ;;  %v937_v27 = vmul.f32 %v936_v21, %v2473_v17  ;;  %v1380_v30 = vstv %s2705_s27  ;;  %s2791_s27 = sld [smem:[#allocation5 + $0x5f]] }
 0x1d1   : > { %1267 = vrot.lane.b32.xlu1 %v1262_v32, %s2052_s7  ;;  %1279 = vrot.lane.b32.xlu0 %v1275_v13, %s2053_s17  ;;  %v1368_v36 = vmul.f32 %v1366_v20, %v2686_v59  ;;  %v1472_v21 = vstv %s2756_s16 }
 0x1d2   : > { %v847_v41 = vadd.f32 %v845_v35, %v839_v37  ;;  %v1381_v37 = vmul.f32 %v1380_v30, %v2677_v48 }
 0x1d3   : > { %v836_v42 = vpop.permute.xlu1 %835  ;;  %v856_v43 = vpop.permute.xlu0 %855 }
 0x1d4   : > { %v840_v46 = vadd.f32 %v836_v42, %v826_v40  ;;  %v861_v47 = vadd.f32 %v856_v43, %v847_v41  ;;  %v2728_v41 = vld [vmem:[#allocation4 + $0x1d] sm:$0xff]  ;;  %v1402_v42 = vstv %s2712_s19  ;;  %s2798_s19 = sld [smem:[#allocation5 + $0x60]] }
 0x1d5   : > { %1281 = vrot.lane.b32.xlu1 %v1276_v44, %s2053_s17  ;;  %1293 = vrot.lane.b32.xlu0 %v1289_v45, %s2054_s15  ;;  %v1403_v33 = vmul.f32 %v1402_v42, %v2728_v41 }
 0x1d6   : > { %v848_v51 = vadd.f32 %v846_v23, %v840_v46  ;;  %v1382_v23 = vmul.f32 %v1380_v30, %v2686_v59  ;;  %v2779_v30 = vld [vmem:[#allocation4 + $0x1e] sm:$0xff] }
 0x1d7   : > { %v858_v52 = vpop.permute.xlu1 %857  ;;  %v870_v55 = vpop.permute.xlu0 %869 }
 0x1d8   : > { %v862_v54 = vadd.f32 %v858_v52, %v848_v51  ;;  %v875_v57 = vadd.f32 %v870_v55, %v861_v47  ;;  %v1416_v51 = vstv %s2721_s24  ;;  %s2802_s24 = sld [smem:[#allocation5 + $0x3f]] }
 0x1d9   : > { %1295 = vrot.lane.b32.xlu1 %v1290_v31, %s2054_s15  ;;  %1315 = vrot.lane.b32.xlu0 %v1311_v34, %s2049_s23  ;;  %v1404_v31 = vmul.f32 %v1402_v42, %v2737_v50  ;;  %v1417_v34 = vmul.f32 %v1416_v51, %v2728_v41 }
 0x1db   : > { %v872_v61 = vpop.permute.xlu1 %871  ;;  %v884_v62 = vpop.permute.xlu0 %883 }
 0x1dc   : > { %v876_v58 = vadd.f32 %v872_v61, %v862_v54  ;;  %v889_v1 = vadd.f32 %v884_v62, %v875_v57 }
 0x1dd   : > { %1317 = vrot.lane.b32.xlu1 %v1312_v7, %s2049_s23  ;;  %1329 = vrot.lane.b32.xlu0 %v1325_v38, %s2050_s4  ;;  %v1418_v7 = vmul.f32 %v1416_v51, %v2737_v50  ;;  %v1431_v38 = vmul.f32 %v1430_v60, %v2728_v41 }
 0x1df   : > { %v886_v3 = vpop.permute.xlu1 %885  ;;  %v898_v4 = vpop.permute.xlu0 %897 }
 0x1e0   : > { %v890_v8 = vadd.f32 %v886_v3, %v876_v58  ;;  %v903_v10 = vadd.f32 %v898_v4, %v889_v1 }
 0x1e1   : > { %1331 = vrot.lane.b32.xlu1 %v1326_v49, %s2050_s4  ;;  %1343 = vrot.lane.b32.xlu0 %v1339_v12, %s2051_s30  ;;  %v1432_v49 = vmul.f32 %v1430_v60, %v2737_v50  ;;  %v1445_v12 = vmul.f32 %v1444_v2, %v2728_v41 }
 0x1e3   : > { %v900_v14 = vpop.permute.xlu1 %899  ;;  %v912_v15 = vpop.permute.xlu0 %911 }
 0x1e4   : > { %v904_v18 = vadd.f32 %v900_v14, %v890_v8  ;;  %v917_v19 = vadd.f32 %v912_v15, %v903_v10  ;;  %v1458_v10 = vstv %s2747_s6 }
 0x1e5   : > { %1345 = vrot.lane.b32.xlu1 %v1340_v29, %s2051_s30  ;;  %1357 = vrot.lane.b32.xlu0 %v1353_v53, %s2052_s7  ;;  %v1446_v53 = vmul.f32 %v1444_v2, %v2737_v50 }
 0x1e7   : > { %v914_v22 = vpop.permute.xlu1 %913  ;;  %v926_v9 = vpop.permute.xlu0 %925 }
 0x1e8   : > { %v918_v26 = vadd.f32 %v914_v22, %v904_v18  ;;  %v931_v28 = vadd.f32 %v926_v9, %v917_v19  ;;  %v1459_v18 = vmul.f32 %v1458_v10, %v2728_v41  ;;  %v1029_v19 = vmul.f32 %v1028_v11, %v2524_v6 }
 0x1e9   : > { %1359 = vrot.lane.b32.xlu1 %v1354_v24, %s2052_s7  ;;  %1371 = vrot.lane.b32.xlu0 %v1367_v25, %s2053_s17 }
 0x1ea   : > { %v939_v32 = vadd.f32 %v937_v27, %v931_v28  ;;  %v1473_v27 = vmul.f32 %v1472_v21, %v2728_v41  ;;  %v1030_v28 = vmul.f32 %v1028_v11, %v2533_v16  ;;  %v1508_v16 = vstv %s2772_s20  ;;  %s1592_s20 = scalar_lea.sflag [#allocation7], %s2194_s3 }
 0x1eb   : > { %v928_v13 = vpop.permute.xlu1 %927  ;;  %v948_v35 = vpop.permute.xlu0 %947 }
 0x1ec   : > { %v932_v40 = vadd.f32 %v928_v13, %v918_v26  ;;  %v953_v17 = vadd.f32 %v948_v35, %v939_v32  ;;  %v1460_v26 = vmul.f32 %v1458_v10, %v2737_v50  ;;  %v1494_v32 = vstv %s2763_s18 }
 0x1ed   : > { %1373 = vrot.lane.b32.xlu1 %v1368_v36, %s2053_s17  ;;  %1385 = vrot.lane.b32.xlu0 %v1381_v37, %s2054_s15  ;;  %v1474_v37 = vmul.f32 %v1472_v21, %v2737_v50 }
 0x1ee   : > { %v940_v43 = vadd.f32 %v938_v39, %v932_v40  ;;  %v1495_v39 = vmul.f32 %v1494_v32, %v2779_v30  ;;  %v2788_v40 = vld [vmem:[#allocation4 + $0x26] sm:$0xff] }
 0x1ef   : > { %v950_v44 = vpop.permute.xlu1 %949  ;;  %v962_v45 = vpop.permute.xlu0 %961 }
 0x1f0   : > { %v954_v46 = vadd.f32 %v950_v44, %v940_v43  ;;  %v967_v47 = vadd.f32 %v962_v45, %v953_v17  ;;  %v1496_v43 = vmul.f32 %v1494_v32, %v2788_v40  ;;  %v1509_v44 = vmul.f32 %v1508_v16, %v2779_v30 }
 0x1f1   : > { %1387 = vrot.lane.b32.xlu1 %v1382_v23, %s2054_s15  ;;  %1407 = vrot.lane.b32.xlu0 %v1403_v33, %s2049_s23  ;;  %v1522_v45 = vstv %s2782_s26  ;;  %s2055_s26 = smov [#allocation10]  }
 0x1f2   : > { %v1523_v51 = vmul.f32 %v1522_v45, %v2779_v30  ;;  %v1524_v60 = vmul.f32 %v1522_v45, %v2788_v40 }
 0x1f3   : > { %v964_v52 = vpop.permute.xlu1 %963  ;;  %v976_v55 = vpop.permute.xlu0 %975 }
 0x1f4   : > { %v968_v54 = vadd.f32 %v964_v52, %v954_v46  ;;  %v981_v57 = vadd.f32 %v976_v55, %v967_v47  ;;  %v1510_v47 = vmul.f32 %v1508_v16, %v2788_v40  ;;  %v1536_v55 = vstv %s2791_s27  ;;  %s1960_s27 = sshll.u32 %s2055_s26, 4  ;;  %s1961_s27 = int_to_ptr.vmem [resolvable:$false] %s1960_s27 }
 0x1f5   : > { %1409 = vrot.lane.b32.xlu1 %v1404_v31, %s2049_s23  ;;  %1421 = vrot.lane.b32.xlu0 %v1417_v34, %s2050_s4 }
 0x1f7   : > { %v978_v61 = vpop.permute.xlu1 %977  ;;  %v990_v62 = vpop.permute.xlu0 %989 }
 0x1f8   : > { %v982_v58 = vadd.f32 %v978_v61, %v968_v54  ;;  %v995_v1 = vadd.f32 %v990_v62, %v981_v57  ;;  %v1537_v61 = vmul.f32 %v1536_v55, %v2779_v30 }
 0x1f9   : > { %1423 = vrot.lane.b32.xlu1 %v1418_v7, %s2050_s4  ;;  %1435 = vrot.lane.b32.xlu0 %v1431_v38, %s2051_s30  ;;  %v1550_v38 = vstv %s2798_s19  ;;  %s1962_s19 = scalar_lea.vmem %s1961_s27, 512 }
 0x1fb   : > { %v992_v3 = vpop.permute.xlu1 %991  ;;  %v1004_v4 = vpop.permute.xlu0 %1003 }
 0x1fc   : > { %v996_v8 = vadd.f32 %v992_v3, %v982_v58  ;;  %v1009_v14 = vadd.f32 %v1004_v4, %v995_v1  ;;  %v1120_v58 = vstv %s2802_s24 }
 0x1fd   : > { %1437 = vrot.lane.b32.xlu1 %v1432_v49, %s2051_s30  ;;  %1449 = vrot.lane.b32.xlu0 %v1445_v12, %s2052_s7  ;;  %v1538_v49 = vmul.f32 %v1536_v55, %v2788_v40  ;;  %v1551_v12 = vmul.f32 %v1550_v38, %v2779_v30  ;;  %v1121_v10 = vmul.f32 %v1120_v58, %v2575_v0 }
 0x1fe   : > { %v1122_v21 = vmul.f32 %v1120_v58, %v2584_v5 }
 0x1ff   : > { %v1006_v15 = vpop.permute.xlu1 %1005  ;;  %v1018_v29 = vpop.permute.xlu0 %1017 }
 0x200   : > { %v1023_v20 = vadd.f32 %v1018_v29, %v1009_v14  ;;  %v1010_v22 = vadd.f32 %v1006_v15, %v996_v8  ;;  %v1564_v14 = vstv %s2807_s25 }
 0x201   : > { %1451 = vrot.lane.b32.xlu1 %v1446_v53, %s2052_s7  ;;  %1463 = vrot.lane.b32.xlu0 %v1459_v18, %s2053_s17 }
 0x202   : > { %v1031_v9 = vadd.f32 %v1029_v19, %v1023_v20  ;;  %v1552_v19 = vmul.f32 %v1550_v38, %v2788_v40  ;;  %v1565_v20 = vmul.f32 %v1564_v14, %v2779_v30 }
 0x203   : > { %v1020_v24 = vpop.permute.xlu1 %1019  ;;  %v1040_v25 = vpop.permute.xlu0 %1039 }
 0x204   : > { %v1024_v6 = vadd.f32 %v1020_v24, %v1010_v22  ;;  %v1045_v23 = vadd.f32 %v1040_v25, %v1031_v9  ;;  %v1566_v25 = vmul.f32 %v1564_v14, %v2788_v40 }
 0x205   : > { %1465 = vrot.lane.b32.xlu1 %v1460_v26, %s2053_s17  ;;  %1477 = vrot.lane.b32.xlu0 %v1473_v27, %s2054_s15 }
 0x206   : > { %v1032_v13 = vadd.f32 %v1030_v28, %v1024_v6 }
 0x207   : > { %v1042_v35 = vpop.permute.xlu1 %1041  ;;  %v1054_v36 = vpop.permute.xlu0 %1053 }
 0x208   : > { %v1059_v52 = vadd.f32 %v1054_v36, %v1045_v23  ;;  %v1046_v31 = vadd.f32 %v1042_v35, %v1032_v13 }
 0x209   : > { %1479 = vrot.lane.b32.xlu1 %v1474_v37, %s2054_s15  ;;  %1499 = vrot.lane.b32.xlu0 %v1495_v39, %s2049_s23 }
 0x20b   : > { %v1056_v17 = vpop.permute.xlu1 %1055  ;;  %v1068_v42 = vpop.permute.xlu0 %1067 }
 0x20c   : > { %v1073_v34 = vadd.f32 %v1068_v42, %v1059_v52  ;;  %v1060_v62 = vadd.f32 %v1056_v17, %v1046_v31 }
 0x20d   : > { %1501 = vrot.lane.b32.xlu1 %v1496_v43, %s2049_s23  ;;  %1513 = vrot.lane.b32.xlu0 %v1509_v44, %s2050_s4  ;;  %s1782_s23 = sld [smem:[#allocation5 + $0x46]] }
 0x20f   : > { %v1070_v33 = vpop.permute.xlu1 %1069  ;;  %v1082_v46 = vpop.permute.xlu0 %1081 }
 0x210   : > { %v1087_v7 = vadd.f32 %v1082_v46, %v1073_v34  ;;  %v1074_v1 = vadd.f32 %v1070_v33, %v1060_v62 }
 0x211   : > { %1515 = vrot.lane.b32.xlu1 %v1510_v47, %s2050_s4  ;;  %1527 = vrot.lane.b32.xlu0 %v1523_v51, %s2051_s30  ;;  %s1789_s4 = sld [smem:[#allocation5 + $0x4d]] }
 0x213   : > { %v1084_v54 = vpop.permute.xlu1 %1083  ;;  %v1096_v57 = vpop.permute.xlu0 %1095  ;;  %v1212_v17 = vstv %s1782_s23 }
 0x214   : > { %v1101_v2 = vadd.f32 %v1096_v57, %v1087_v7  ;;  %v1088_v8 = vadd.f32 %v1084_v54, %v1074_v1  ;;  %v1213_v46 = vmul.f32 %v1212_v17, %v2626_v56  ;;  %v1214_v34 = vmul.f32 %v1212_v17, %v2635_v63 }
 0x215   : > { %1529 = vrot.lane.b32.xlu1 %v1524_v60, %s2051_s30  ;;  %1541 = vrot.lane.b32.xlu0 %v1537_v61, %s2052_s7  ;;  %s1796_s30 = sld [smem:[#allocation5 + $0x54]] }
 0x217   : > { %v1098_v3 = vpop.permute.xlu1 %1097  ;;  %v1110_v4 = vpop.permute.xlu0 %1109 }
 0x218   : > { %v1115_v11 = vadd.f32 %v1110_v4, %v1101_v2  ;;  %v1102_v15 = vadd.f32 %v1098_v3, %v1088_v8  ;;  %v1304_v8 = vstv %s1789_s4 }
 0x219   : > { %1543 = vrot.lane.b32.xlu1 %v1538_v49, %s2052_s7  ;;  %1555 = vrot.lane.b32.xlu0 %v1551_v12, %s2053_s17  ;;  %s1803_s7 = sld [smem:[#allocation5 + $0x5b]] }
 0x21a   : > { %v1123_v29 = vadd.f32 %v1121_v10, %v1115_v11 }
 0x21b   : > { %v1112_v53 = vpop.permute.xlu1 %1111  ;;  %v1132_v18 = vpop.permute.xlu0 %1131 }
 0x21c   : > { %v1116_v22 = vadd.f32 %v1112_v53, %v1102_v15  ;;  %v1137_v28 = vadd.f32 %v1132_v18, %v1123_v29  ;;  %v1305_v53 = vmul.f32 %v1304_v8, %v2677_v48 }
 0x21d   : > { %1557 = vrot.lane.b32.xlu1 %v1552_v19, %s2053_s17  ;;  %1569 = vrot.lane.b32.xlu0 %v1565_v20, %s2054_s15  ;;  %s1712_s17 = sshll.u32 %s2194_s3, 4 }
 0x21e   : > { %v1124_v0 = vadd.f32 %v1122_v21, %v1116_v22  ;;  %s192_s5 = scalar_lea.vmem [#allocation10], %s1712_s17 }
 0x21f   : > { %v1134_v9 = vpop.permute.xlu1 %1133  ;;  %v1146_v24 = vpop.permute.xlu0 %1145  ;;  %s1605_s6 = sshll.u32 %s192_s5, 4  ;;  %s2846_s6 = int_to_ptr.vmem [resolvable:$true] %s1605_s6 }
 0x220   : > { %v1151_v13 = vadd.f32 %v1146_v24, %v1137_v28  ;;  %v1138_v5 = vadd.f32 %v1134_v9, %v1124_v0  ;;  %v1306_v0 = vmul.f32 %v1304_v8, %v2686_v59  ;;  %p1963_p1 = scmp.lt.s32.totalorder %s2846_s6, %s1961_s27 }
 0x221   : > { %1571 = vrot.lane.b32.xlu1 %v1566_v25, %s2054_s15  ;;  %s1818_s15 = sshll.u32 %s2032_s12, 8  ;;  %s1956_s12 = scalar_lea.vmem %s2846_s6, 256 }
 0x222   : > { %s2844_s18 = scalar_lea.hbm %s2897_s2, %s1818_s15  ;;  %p1957_p3 = scmp.ne.s32.totalorder %s2846_s6, %s1956_s12 }
 0x223   : > { %v1148_v26 = vpop.permute.xlu1 %1147  ;;  %v1160_v27 = vpop.permute.xlu0 %1159  ;;  %p1964_p10 = scmp.lt.s32.totalorder %s1962_s19, %s1956_s12 }
 0x224   : > { %v1165_v35 = vadd.f32 %v1160_v27, %v1151_v13  ;;  %v1152_v39 = vadd.f32 %v1148_v26, %v1138_v5  ;;  %p1958_p12 = pnand %p1957_p3, %p2908_p7 }
 0x225   : > { %p1965_p8 = por %p1964_p10, %p1963_p1 }
 0x226   : > { %p1959_p2 = pneg %p1958_p12 }
 0x227   : > { %v1162_v6 = vpop.permute.xlu1 %1161  ;;  %v1174_v32 = vpop.permute.xlu0 %1173 }
 0x228   : > { %v1179_v16 = vadd.f32 %v1174_v32, %v1165_v35  ;;  %v1166_v42 = vadd.f32 %v1162_v6, %v1152_v39  ;;  %p1966_p9 = pnand %p1965_p8, %p1959_p2 }
 0x22b   : > { %v1176_v36 = vpop.permute.xlu1 %1175  ;;  %v1188_v37 = vpop.permute.xlu0 %1187 }
 0x22c   : > { %v1193_v43 = vadd.f32 %v1188_v37, %v1179_v16  ;;  %v1180_v23 = vadd.f32 %v1176_v36, %v1166_v42  ;;  %v1396_v16 = vstv %s1796_s30 }
 0x22f   : > { %v1190_v44 = vpop.permute.xlu1 %1189  ;;  %v1202_v45 = vpop.permute.xlu0 %1201 }
 0x230   : > { %v1207_v33 = vadd.f32 %v1202_v45, %v1193_v43  ;;  %v1194_v47 = vadd.f32 %v1190_v44, %v1180_v23  ;;  %v1397_v23 = vmul.f32 %v1396_v16, %v2728_v41 }
 0x232   : > { %v1215_v51 = vadd.f32 %v1213_v46, %v1207_v33 }
 0x233   : > { %v1204_v52 = vpop.permute.xlu1 %1203  ;;  %v1224_v55 = vpop.permute.xlu0 %1223 }
 0x234   : > { %v1208_v31 = vadd.f32 %v1204_v52, %v1194_v47  ;;  %v1229_v7 = vadd.f32 %v1224_v55, %v1215_v51  ;;  %v1398_v55 = vmul.f32 %v1396_v16, %v2737_v50 }
 0x236   : > { %v1216_v54 = vadd.f32 %v1214_v34, %v1208_v31 }
 0x237   : > { %v1226_v57 = vpop.permute.xlu1 %1225  ;;  %v1238_v60 = vpop.permute.xlu0 %1237 }
 0x238   : > { %v1243_v1 = vadd.f32 %v1238_v60, %v1229_v7  ;;  %v1230_v2 = vadd.f32 %v1226_v57, %v1216_v54 }
 0x23b   : > { %v1240_v61 = vpop.permute.xlu1 %1239  ;;  %v1252_v62 = vpop.permute.xlu0 %1251 }
 0x23c   : > { %v1257_v3 = vadd.f32 %v1252_v62, %v1243_v1  ;;  %v1244_v49 = vadd.f32 %v1240_v61, %v1230_v2 }
 0x23f   : > { %v1254_v38 = vpop.permute.xlu1 %1253  ;;  %v1266_v58 = vpop.permute.xlu0 %1265 }
 0x240   : > { %v1271_v12 = vadd.f32 %v1266_v58, %v1257_v3  ;;  %v1258_v10 = vadd.f32 %v1254_v38, %v1244_v49 }
 0x243   : > { %v1268_v56 = vpop.permute.xlu1 %1267  ;;  %v1280_v4 = vpop.permute.xlu0 %1279 }
 0x244   : > { %v1285_v11 = vadd.f32 %v1280_v4, %v1271_v12  ;;  %v1272_v15 = vadd.f32 %v1268_v56, %v1258_v10  ;;  %v1488_v4 = vstv %s1803_s7 }
 0x247   : > { %v1282_v63 = vpop.permute.xlu1 %1281  ;;  %v1294_v14 = vpop.permute.xlu0 %1293 }
 0x248   : > { %v1299_v29 = vadd.f32 %v1294_v14, %v1285_v11  ;;  %v1286_v18 = vadd.f32 %v1282_v63, %v1272_v15  ;;  %v1489_v63 = vmul.f32 %v1488_v4, %v2779_v30 }
 0x24a   : > { %v1307_v19 = vadd.f32 %v1305_v53, %v1299_v29 }
 0x24b   : > { %v1296_v20 = vpop.permute.xlu1 %1295  ;;  %v1316_v21 = vpop.permute.xlu0 %1315 }
 0x24c   : > { %v1300_v22 = vadd.f32 %v1296_v20, %v1286_v18  ;;  %v1321_v28 = vadd.f32 %v1316_v21, %v1307_v19  ;;  %v1490_v19 = vmul.f32 %v1488_v4, %v2788_v40 }
 0x24e   : > { %v1308_v9 = vadd.f32 %v1306_v0, %v1300_v22 }
 0x24f   : > { %v1318_v24 = vpop.permute.xlu1 %1317  ;;  %v1330_v25 = vpop.permute.xlu0 %1329 }
 0x250   : > { %v1335_v13 = vadd.f32 %v1330_v25, %v1321_v28  ;;  %v1322_v5 = vadd.f32 %v1318_v24, %v1308_v9 }
 0x253   : > { %v1332_v26 = vpop.permute.xlu1 %1331  ;;  %v1344_v27 = vpop.permute.xlu0 %1343 }
 0x254   : > { %v1349_v35 = vadd.f32 %v1344_v27, %v1335_v13  ;;  %v1336_v37 = vadd.f32 %v1332_v26, %v1322_v5 }
 0x257   : > { %v1346_v6 = vpop.permute.xlu1 %1345  ;;  %v1358_v32 = vpop.permute.xlu0 %1357 }
 0x258   : > { %v1363_v39 = vadd.f32 %v1358_v32, %v1349_v35  ;;  %v1350_v17 = vadd.f32 %v1346_v6, %v1336_v37 }
 0x25b   : > { %v1360_v48 = vpop.permute.xlu1 %1359  ;;  %v1372_v36 = vpop.permute.xlu0 %1371 }
 0x25c   : > { %v1377_v42 = vadd.f32 %v1372_v36, %v1363_v39  ;;  %v1364_v44 = vadd.f32 %v1360_v48, %v1350_v17 }
 0x25f   : > { %v1374_v59 = vpop.permute.xlu1 %1373  ;;  %v1386_v43 = vpop.permute.xlu0 %1385 }
 0x260   : > { %v1391_v45 = vadd.f32 %v1386_v43, %v1377_v42  ;;  %v1378_v33 = vadd.f32 %v1374_v59, %v1364_v44 }
 0x262   : > { %v1399_v46 = vadd.f32 %v1397_v23, %v1391_v45 }
 0x263   : > { %v1388_v47 = vpop.permute.xlu1 %1387  ;;  %v1408_v51 = vpop.permute.xlu0 %1407 }
 0x264   : > { %v1392_v52 = vadd.f32 %v1388_v47, %v1378_v33  ;;  %v1413_v61 = vadd.f32 %v1408_v51, %v1399_v46 }
 0x266   : > { %v1400_v31 = vadd.f32 %v1398_v55, %v1392_v52 }
 0x267   : > { %v1410_v34 = vpop.permute.xlu1 %1409  ;;  %v1422_v54 = vpop.permute.xlu0 %1421 }
 0x268   : > { %v1427_v38 = vadd.f32 %v1422_v54, %v1413_v61  ;;  %v1414_v58 = vadd.f32 %v1410_v34, %v1400_v31 }
 0x26b   : > { %v1424_v57 = vpop.permute.xlu1 %1423  ;;  %v1436_v60 = vpop.permute.xlu0 %1435 }
 0x26c   : > { %v1441_v1 = vadd.f32 %v1436_v60, %v1427_v38  ;;  %v1428_v3 = vadd.f32 %v1424_v57, %v1414_v58 }
 0x26f   : > { %v1438_v62 = vpop.permute.xlu1 %1437  ;;  %v1450_v7 = vpop.permute.xlu0 %1449 }
 0x270   : > { %v1455_v56 = vadd.f32 %v1450_v7, %v1441_v1  ;;  %v1442_v49 = vadd.f32 %v1438_v62, %v1428_v3 }
 0x273   : > { %v1452_v41 = vpop.permute.xlu1 %1451  ;;  %v1464_v2 = vpop.permute.xlu0 %1463 }
 0x274   : > { %v1469_v12 = vadd.f32 %v1464_v2, %v1455_v56  ;;  %v1456_v10 = vadd.f32 %v1452_v41, %v1442_v49 }
 0x277   : > { %v1466_v50 = vpop.permute.xlu1 %1465  ;;  %v1478_v8 = vpop.permute.xlu0 %1477 }
 0x278   : > { %v1483_v11 = vadd.f32 %v1478_v8, %v1469_v12  ;;  %v1470_v14 = vadd.f32 %v1466_v50, %v1456_v10 }
 0x27a   : > { %v1491_v15 = vadd.f32 %v1489_v63, %v1483_v11 }
 0x27b   : > { %v1480_v29 = vpop.permute.xlu1 %1479  ;;  %v1500_v53 = vpop.permute.xlu0 %1499 }
 0x27c   : > { %v1484_v18 = vadd.f32 %v1480_v29, %v1470_v14  ;;  %v1505_v24 = vadd.f32 %v1500_v53, %v1491_v15 }
 0x27e   : > { %v1492_v20 = vadd.f32 %v1490_v19, %v1484_v18 }
 0x27f   : > { %v1502_v21 = vpop.permute.xlu1 %1501  ;;  %v1514_v22 = vpop.permute.xlu0 %1513 }
 0x280   : > { %v1519_v27 = vadd.f32 %v1514_v22, %v1505_v24  ;;  %v1506_v28 = vadd.f32 %v1502_v21, %v1492_v20 }
 0x283   : > { %v1516_v0 = vpop.permute.xlu1 %1515  ;;  %v1528_v9 = vpop.permute.xlu0 %1527 }
 0x284   : > { %v1533_v6 = vadd.f32 %v1528_v9, %v1519_v27  ;;  %v1520_v13 = vadd.f32 %v1516_v0, %v1506_v28 }
 0x287   : > { %v1530_v25 = vpop.permute.xlu1 %1529  ;;  %v1542_v26 = vpop.permute.xlu0 %1541 }
 0x288   : > { %v1547_v5 = vadd.f32 %v1542_v26, %v1533_v6  ;;  %v1534_v35 = vadd.f32 %v1530_v25, %v1520_v13 }
 0x28b   : > { %v1544_v32 = vpop.permute.xlu1 %1543  ;;  %v1556_v30 = vpop.permute.xlu0 %1555 }
 0x28c   : > { %v1561_v48 = vadd.f32 %v1556_v30, %v1547_v5  ;;  %v1548_v40 = vadd.f32 %v1544_v32, %v1534_v35 }
 0x28f   : > { %v1558_v36 = vpop.permute.xlu1 %1557  ;;  %v1570_v37 = vpop.permute.xlu0 %1569 }
 0x290   : > { %v1575_v39 = vadd.f32 %v1570_v37, %v1561_v48  ;;  %v1562_v16 = vadd.f32 %v1558_v36, %v1548_v40 }
 0x292   : > { %v1810_v17 = vmul.f32 -1.442695, %v1575_v39 }
 0x293   : > { %v1572_v42 = vpop.permute.xlu1 %1571 }
 0x294   : > { %1905 = vpow2.f32 %v1810_v17  ;;  %v1576_v59 = vadd.f32 %v1572_v42, %v1562_v16 }
 0x296   : > { %v1811_v43 = vmul.f32 -1.442695, %v1576_v59 }
 0x298   : > { %1907 = vpow2.f32 %v1811_v43 }
 0x2a1   : > { %v1906_v44 = vpop.eup %1905 }
 0x2a2   : > { %v1583_v45 = vadd.f32 1.0, %v1906_v44 }
 0x2a4   : > { %1909 = vrcp.f32 %v1583_v45 }
 0x2a5   : > { %v1908_v23 = vpop.eup %1907 }
 0x2a6   : > { %v1584_v33 = vadd.f32 1.0, %v1908_v23 }
 0x2a8   : > { %1911 = vrcp.f32 %v1584_v33 }
 0x2b1   : > { %v1910_v46 = vpop.eup %1909 }
 0x2b2   : > { %1589 = vst.msk [vmem:[%s192_s5] sm:$0xff] %vm198_vm0, %v1910_v46 }
 0x2b5   : > { %v1912_v47 = vpop.eup %1911 }
 0x2b6   : > { %1590 = vst.msk [vmem:[%s192_s5 + $0x8] sm:$0xff] %vm198_vm0, %v1912_v47 }
 0x2b7   : > { %1969 = shalt.err (!%p1966_p9)
}
 0x2b8   : > { %s1970_s24 = scalar_lea.hbm %s2844_s18, 256  ;;  %s1974_s4 = scalar_lea.hbm %s2897_s2, 512 }
 0x2b9   : > { %p1971_p13 = scmp.ne.s32.totalorder %s2844_s18, %s1970_s24  ;;  %p1975_p11 = scmp.lt.s32.totalorder %s2844_s18, %s2897_s2 }
 0x2ba   : > { %p1976_p5 = scmp.lt.s32.totalorder %s1974_s4, %s1970_s24 }
 0x2bb   : > { %p1972_p4 = pnand %p1971_p13, %p2908_p7 }
 0x2bc   : > { %p1977_p0 = por %p1976_p5, %p1975_p11 }
 0x2bd   : > { %p1973_p6 = pneg %p1972_p4 }
 0x2bf   : > { %p1978_p3 = pnand %p1977_p0, %p1973_p6 }
 0x2c1   : > { %1981 = shalt.err (!%p1978_p3)
}
 0x2c2   : > { %s2056_s17 = smov 128   ;;  %s2057_s15 = smov 8  }
 0x2c3   : > { %1825 = dma.vmem_to_hbm [thread:$0]  (%p2908_p7), %s2846_s6, 256, %s2844_s18, %s1592_s20, %s2056_s17, %s2056_s17, %s2057_s15  }
 0x2c4 PF: > { %s1620_s5 = sand.u32 1, %s2020_s9   ;;  %p2909_p12 = scmp.ne.s32.totalorder %s2903_s22, 0 }
 0x2c5   : > { %p2910_p2 = scmp.ge.s32.totalorder %s2040_s14, 2  ;;  %s1621_s8 = scalar_lea.sflag [#allocation7], %s1620_s5 }
 0x2c7   : > { %p1836_p1 = pnand %p2910_p2, %p2909_p12 }
 0x2c9   : > { %p1837_p10 = pneg %p1836_p1 }
 0x2cb   : > { %2015 = dma.done.wait (%p1837_p10), %s1621_s8, 256  }
 0x2cc   : > { %2017 = vsyncadd (%p1837_p10), %s1621_s8, 4294967040  ;;  %s19_s14 = sadd.s32 1, %s2040_s14   ;;  %s2911_s9 = smov %s2024_s10 }
 0x2cd   : > { %p16_p8 = scmp.ge.s32.totalorder %s19_s14, 4   ;;  %s2912_s10 = smov %s2028_s11 }
 0x2ce   : > { %s2913_s11 = smov %s2181_s28  ;;  %s2914_s12 = smov %s2036_s13 }
 0x2cf   : > { %s2915_s13 = smov %s2917_s29  ;;  %18 = sbr.rel (!%p16_p8) target bundleno = 7 (0x7), region = 87 }
 0x2d4   :  { %1626 = vsyncpa [#allocation6], 1 }
 0x2d5   :  { %1628 = vsyncpa [#allocation6 + $0x1], 1 }
 0x2d6   :  { %1629 = vsyncpa [#allocation7], 1 }
 0x2d7   :  { %1631 = vsyncpa [#allocation7 + $0x1], 1 }
 0x2d8   :  { %1632 = vsyncpa [#allocation8], 1 }
 0x2d9   :  { %1634 = vsyncpa [#allocation8 + $0x1], 1 }

</bundles_post_ra>
